<compile_context>
chip_gen: v7x
topology: tpu7x:2x2x1
jax: 0.10.0
libtpu: 0.0.40
codegen_flags: <defaults>
</compile_context>

<pallas_src>
import jax
import jax.numpy as jnp
from jax.experimental import pallas as pl
from jax.experimental.pallas import tpu as pltpu


# ----------------------------- fused Pallas kernel ---------------------------

def _make_lstm_model_kernel(num_layers, seq, hidden, sequence_target):
    """Builds a fused kernel: wavefront LSTM stack + fc head in one body."""

    def kernel(*refs):
        # refs layout:
        #   x_ref,
        #   [wih_t_ref (in,4H), whh_t_ref (H,4H), b_ref (1,4H)] * num_layers,
        #   fcw_t_ref (H, out), fcb_ref (1, out),
        #   out_ref,
        #   ix_ref (seq, 4H) VMEM scratch (layer-0 hoisted input projection),
        #   [hbuf (seq, H) VMEM scratch]   only if sequence_target.
        x_ref = refs[0]
        layer_refs = refs[1:1 + 3 * num_layers]
        fcw_t_ref = refs[1 + 3 * num_layers]
        fcb_ref = refs[2 + 3 * num_layers]
        out_ref = refs[3 + 3 * num_layers]
        ix_ref = refs[4 + 3 * num_layers]
        hbuf = refs[5 + 3 * num_layers] if sequence_target else None

        H = hidden

        # Hoist every layer's weights/bias into values ONCE; they stay live
        # across the whole wavefront (tiny at this size).
        wih_t = [layer_refs[3 * l][...] for l in range(num_layers)]       # (in,4H)
        whh_t = [layer_refs[3 * l + 1][...] for l in range(num_layers)]   # (H,4H)
        bias = [layer_refs[3 * l + 2][...] for l in range(num_layers)]    # (1,4H)

        # Layer-0 input projection for ALL timesteps: one well-shaped GEMM,
        # stored once (lane-dense, 4H == 128), re-read row-by-row via vld off
        # the recurrence critical chain.
        ix_ref[...] = jnp.dot(x_ref[...], wih_t[0],
                              preferred_element_type=jnp.float32) + bias[0]

        h = [jnp.zeros((1, H), jnp.float32) for _ in range(num_layers)]
        c = [jnp.zeros((1, H), jnp.float32) for _ in range(num_layers)]

        def cell(l, pre_act):
            """One LSTM cell update for layer l, given its input pre-activation."""
            gates = pre_act + jnp.dot(h[l], whh_t[l],
                                      preferred_element_type=jnp.float32)   # (1,4H)
            s = jax.nn.sigmoid(gates)        # full-vreg EUP push
            tg = jnp.tanh(gates)             # full-vreg EUP push
            i_g = s[:, 0:H]
            f_g = s[:, H:2 * H]
            g_g = tg[:, 2 * H:3 * H]
            o_g = s[:, 3 * H:4 * H]
            c[l] = f_g * c[l] + i_g * g_g
            h[l] = o_g * jnp.tanh(c[l])      # third EUP push

        # Wavefront: all layers advance one step per wave. Layer l>=1 computes
        # its input projection per step from the freshly produced h[l-1]
        # (register-resident), so its chain interleaves with layer 0's next step.
        for t in range(seq):
            cell(0, ix_ref[t:t + 1, :])
            for l in range(1, num_layers):
                pre = jnp.dot(h[l - 1], wih_t[l],
                              preferred_element_type=jnp.float32) + bias[l]
                cell(l, pre)
            if sequence_target:
                # Off-chain masked row store; consumed only once by fc below.
                hbuf[t:t + 1, :] = h[num_layers - 1]

        # fc head (dropout p=0.0 is the identity).
        fcw_t = fcw_t_ref[...]                                 # (H, out)
        fcb = fcb_ref[...]                                     # (1, out)
        # TODO(synk): out=4 lanes means a masked vst; pad the output slab to a
        # multiple of 128 lanes if output_size/seq ever grow (negligible here).
        if sequence_target:
            out_ref[...] = jnp.dot(hbuf[...], fcw_t,
                                   preferred_element_type=jnp.float32) + fcb
        else:
            out_ref[...] = jnp.dot(h[num_layers - 1], fcw_t,
                                   preferred_element_type=jnp.float32) + fcb

    return kernel


# ------------------------------ JAX wrapper ----------------------------------

_VMEM = pl.BlockSpec(memory_space=pltpu.MemorySpace.VMEM)


def lstm_model_forward(x, params, *, sequence_target=False):
    """Matches LSTMModel.forward (unidirectional, dropout=0.0, zero h0/c0)."""
    # TODO(synk): bidirectional=True and inter-layer dropout>0 not implemented
    # (PyTorch module defaults are bidirectional=False, dropout=0.0).
    x = x.astype(jnp.float32)
    seq = x.shape[0]
    layers = params["layers"]
    num_layers = len(layers)
    H = layers[0]["w_hh_t"].shape[0]
    out_size = params["fc_w_t"].shape[1]

    flat_inputs = [x]
    for lp in layers:
        flat_inputs += [lp["w_ih_t"], lp["w_hh_t"], lp["b"]]
    flat_inputs += [params["fc_w_t"], params["fc_b"]]

    out_rows = seq if sequence_target else 1
    kernel = _make_lstm_model_kernel(num_layers, seq, H, sequence_target)

    scratch_shapes = [pltpu.VMEM((seq, 4 * H), jnp.float32)]   # layer-0 ix
    if sequence_target:
        scratch_shapes.append(pltpu.VMEM((seq, H), jnp.float32))  # last-layer h seq

    out = pl.pallas_call(
        kernel,
        out_shape=jax.ShapeDtypeStruct((out_rows, out_size), jnp.float32),
        in_specs=[_VMEM] * len(flat_inputs),
        out_specs=_VMEM,
        scratch_shapes=scratch_shapes,
    )(*flat_inputs)

    return out if sequence_target else out[0]          # (output_size,)


# ----------------------- deterministic parameter init ------------------------
# Weights stored PRE-TRANSPOSED and biases pre-summed (no per-call .T / add).

def init_params(key, input_size, hidden_size, num_layers, output_size):
    k = 1.0 / jnp.sqrt(hidden_size)
    layers = []
    for layer in range(num_layers):
        in_dim = input_size if layer == 0 else hidden_size
        key, k1, k2, k3, k4 = jax.random.split(key, 5)
        w_ih = jax.random.uniform(k1, (4 * hidden_size, in_dim), jnp.float32, -k, k)
        w_hh = jax.random.uniform(k2, (4 * hidden_size, hidden_size), jnp.float32, -k, k)
        b_ih = jax.random.uniform(k3, (4 * hidden_size,), jnp.float32, -k, k)
        b_hh = jax.random.uniform(k4, (4 * hidden_size,), jnp.float32, -k, k)
        layers.append(dict(
            w_ih_t=jnp.asarray(w_ih.T),                 # (in_dim, 4H)
            w_hh_t=jnp.asarray(w_hh.T),                 # (H, 4H)
            b=(b_ih + b_hh)[None, :],                   # (1, 4H)
        ))
    key, k5, k6 = jax.random.split(key, 3)
    fc_w = jax.random.uniform(k5, (output_size, hidden_size), jnp.float32, -k, k)
    fc_b = jax.random.uniform(k6, (output_size,), jnp.float32, -k, k)
    return dict(layers=layers, fc_w_t=jnp.asarray(fc_w.T), fc_b=fc_b[None, :])


# ------------------------- pure-JAX reference check --------------------------

def reference_forward(x, params, *, sequence_target=False):
    h_seq = x.astype(jnp.float32)
    for lp in params["layers"]:
        H = lp["w_hh_t"].shape[0]
        b = lp["b"][0]

        def cell(carry, x_t, lp=lp, b=b):
            h, c = carry
            gates = x_t @ lp["w_ih_t"] + h @ lp["w_hh_t"] + b
            i, f, g, o = jnp.split(gates, 4)
            i, f, o = jax.nn.sigmoid(i), jax.nn.sigmoid(f), jax.nn.sigmoid(o)
            g = jnp.tanh(g)
            c = f * c + i * g
            h = o * jnp.tanh(c)
            return (h, c), h

        (_, _), h_seq = jax.lax.scan(
            cell, (jnp.zeros((H,), jnp.float32), jnp.zeros((H,), jnp.float32)), h_seq)
    feat = h_seq if sequence_target else h_seq[-1]
    return feat @ params["fc_w_t"] + params["fc_b"][0]


# ----------------------------------- main ------------------------------------

if __name__ == "__main__":
    seq_len, input_size, hidden_size, num_layers, output_size = 8, 16, 32, 2, 4

    key = jax.random.PRNGKey(0)
    key, kx, kp = jax.random.split(key, 3)
    x = jax.random.normal(kx, (seq_len, input_size), jnp.float32)
    params = init_params(kp, input_size, hidden_size, num_layers, output_size)

    # Default path: Sequence_Target=False -> (output_size,)
    out = jax.block_until_ready(lstm_model_forward(x, params))
    ref = reference_forward(x, params)
    assert out.shape == (output_size,), out.shape
    assert jnp.allclose(out, ref, atol=1e-4, rtol=1e-4), (out, ref)

    # Sequence_Target=True path: (seq, output_size)
    out_seq = jax.block_until_ready(
        lstm_model_forward(x, params, sequence_target=True))
    ref_seq = reference_forward(x, params, sequence_target=True)
    assert out_seq.shape == (seq_len, output_size), out_seq.shape
    assert jnp.allclose(out_seq, ref_seq, atol=1e-4, rtol=1e-4), (out_seq, ref_seq)

    print("KERNEL_OK")
</pallas_src>

<mosaic_0001>
module attributes {stable_mosaic.version = 11 : i64} {
  func.func @kernel(%arg0: memref<8x16xf32, #tpu.memory_space<vmem>>, %arg1: memref<16x128xf32, #tpu.memory_space<vmem>>, %arg2: memref<32x128xf32, #tpu.memory_space<vmem>>, %arg3: memref<1x128xf32, #tpu.memory_space<vmem>>, %arg4: memref<32x128xf32, #tpu.memory_space<vmem>>, %arg5: memref<32x128xf32, #tpu.memory_space<vmem>>, %arg6: memref<1x128xf32, #tpu.memory_space<vmem>>, %arg7: memref<32x4xf32, #tpu.memory_space<vmem>>, %arg8: memref<1x4xf32, #tpu.memory_space<vmem>>, %arg9: memref<1x4xf32, #tpu.memory_space<vmem>>, %arg10: memref<8x128xf32, #tpu.memory_space<vmem>>) attributes {dimension_semantics = [], scalar_prefetch = 0 : i64, scratch_operands = 1 : i64, tpu.core_type = #tpu.core_type<tc>} {
    %c0 = arith.constant 0 : index
    %c0_0 = arith.constant 0 : index
    %0 = vector.load %arg1[%c0, %c0_0] : memref<16x128xf32, #tpu.memory_space<vmem>>, vector<16x128xf32>
    %c0_1 = arith.constant 0 : index
    %c0_2 = arith.constant 0 : index
    %1 = vector.load %arg4[%c0_1, %c0_2] : memref<32x128xf32, #tpu.memory_space<vmem>>, vector<32x128xf32>
    %c0_3 = arith.constant 0 : index
    %c0_4 = arith.constant 0 : index
    %2 = vector.load %arg2[%c0_3, %c0_4] : memref<32x128xf32, #tpu.memory_space<vmem>>, vector<32x128xf32>
    %c0_5 = arith.constant 0 : index
    %c0_6 = arith.constant 0 : index
    %3 = vector.load %arg5[%c0_5, %c0_6] : memref<32x128xf32, #tpu.memory_space<vmem>>, vector<32x128xf32>
    %c0_7 = arith.constant 0 : index
    %c0_8 = arith.constant 0 : index
    %4 = vector.load %arg3[%c0_7, %c0_8] : memref<1x128xf32, #tpu.memory_space<vmem>>, vector<1x128xf32>
    %c0_9 = arith.constant 0 : index
    %c0_10 = arith.constant 0 : index
    %5 = vector.load %arg6[%c0_9, %c0_10] : memref<1x128xf32, #tpu.memory_space<vmem>>, vector<1x128xf32>
    %c0_11 = arith.constant 0 : index
    %c0_12 = arith.constant 0 : index
    %6 = vector.load %arg0[%c0_11, %c0_12] : memref<8x16xf32, #tpu.memory_space<vmem>>, vector<8x16xf32>
    %cst = arith.constant dense<0.000000e+00> : vector<8x128xf32>
    %7 = tpu.matmul %6, %0, %cst {dimension_numbers = #tpu.dot_dimension_numbers<[1], [0], [0], [1], [0, 0, 1, 1], [], []>} : vector<8x16xf32>, vector<16x128xf32>, vector<8x128xf32> -> vector<8x128xf32>
    %8 = vector.broadcast %4 : vector<1x128xf32> to vector<8x128xf32>
    %9 = arith.addf %7, %8 : vector<8x128xf32>
    %c0_13 = arith.constant 0 : index
    %c0_14 = arith.constant 0 : index
    %10 = vector.load %arg10[%c0_13, %c0_14] : memref<8x128xf32, #tpu.memory_space<vmem>>, vector<8x128xf32>
    tpu.vector_store %arg10[%c0_13, %c0_14], %9 {strides = array<i32>} : memref<8x128xf32, #tpu.memory_space<vmem>>, vector<8x128xf32>,
    %cst_15 = arith.constant 0.000000e+00 : f32
    %11 = vector.broadcast %cst_15 : f32 to vector<1x32xf32>
    %cst_16 = arith.constant 0.000000e+00 : f32
    %12 = vector.broadcast %cst_16 : f32 to vector<1x32xf32>
    %cst_17 = arith.constant 0.000000e+00 : f32
    %13 = vector.broadcast %cst_17 : f32 to vector<1x32xf32>
    %cst_18 = arith.constant 0.000000e+00 : f32
    %14 = vector.broadcast %cst_18 : f32 to vector<1x32xf32>
    %c0_19 = arith.constant 0 : index
    %c0_20 = arith.constant 0 : index
    %15 = vector.load %arg10[%c0_19, %c0_20] : memref<8x128xf32, #tpu.memory_space<vmem>>, vector<1x128xf32>
    %cst_21 = arith.constant dense<0.000000e+00> : vector<1x128xf32>
    %16 = tpu.matmul %11, %2, %cst_21 {dimension_numbers = #tpu.dot_dimension_numbers<[1], [0], [0], [1], [0, 0, 1, 1], [], []>} : vector<1x32xf32>, vector<32x128xf32>, vector<1x128xf32> -> vector<1x128xf32>
    %17 = arith.addf %15, %16 : vector<1x128xf32>
    %18 = arith.negf %17 : vector<1x128xf32>
    %19 = math.exp %18 : vector<1x128xf32>
    %cst_22 = arith.constant 1.000000e+00 : f32
    %20 = vector.broadcast %cst_22 : f32 to vector<1x128xf32>
    %21 = arith.addf %20, %19 : vector<1x128xf32>
    %22 = arith.divf %20, %21 : vector<1x128xf32>
    %23 = math.tanh %17 : vector<1x128xf32>
    %24 = vector.extract_strided_slice %22 {offsets = [0, 0], sizes = [1, 32], strides = [1, 1]} : vector<1x128xf32> to vector<1x32xf32>
    %25 = vector.extract_strided_slice %22 {offsets = [0, 32], sizes = [1, 32], strides = [1, 1]} : vector<1x128xf32> to vector<1x32xf32>
    %26 = vector.extract_strided_slice %23 {offsets = [0, 64], sizes = [1, 32], strides = [1, 1]} : vector<1x128xf32> to vector<1x32xf32>
    %27 = vector.extract_strided_slice %22 {offsets = [0, 96], sizes = [1, 32], strides = [1, 1]} : vector<1x128xf32> to vector<1x32xf32>
    %28 = arith.mulf %25, %13 : vector<1x32xf32>
    %29 = arith.mulf %24, %26 : vector<1x32xf32>
    %30 = arith.addf %28, %29 : vector<1x32xf32>
    %31 = math.tanh %30 : vector<1x32xf32>
    %32 = arith.mulf %27, %31 : vector<1x32xf32>
    %cst_23 = arith.constant dense<0.000000e+00> : vector<1x128xf32>
    %33 = tpu.matmul %32, %1, %cst_23 {dimension_numbers = #tpu.dot_dimension_numbers<[1], [0], [0], [1], [0, 0, 1, 1], [], []>} : vector<1x32xf32>, vector<32x128xf32>, vector<1x128xf32> -> vector<1x128xf32>
    %34 = arith.addf %33, %5 : vector<1x128xf32>
    %cst_24 = arith.constant dense<0.000000e+00> : vector<1x128xf32>
    %35 = tpu.matmul %12, %3, %cst_24 {dimension_numbers = #tpu.dot_dimension_numbers<[1], [0], [0], [1], [0, 0, 1, 1], [], []>} : vector<1x32xf32>, vector<32x128xf32>, vector<1x128xf32> -> vector<1x128xf32>
    %36 = arith.addf %34, %35 : vector<1x128xf32>
    %37 = arith.negf %36 : vector<1x128xf32>
    %38 = math.exp %37 : vector<1x128xf32>
    %cst_25 = arith.constant 1.000000e+00 : f32
    %39 = vector.broadcast %cst_25 : f32 to vector<1x128xf32>
    %40 = arith.addf %39, %38 : vector<1x128xf32>
    %41 = arith.divf %39, %40 : vector<1x128xf32>
    %42 = math.tanh %36 : vector<1x128xf32>
    %43 = vector.extract_strided_slice %41 {offsets = [0, 0], sizes = [1, 32], strides = [1, 1]} : vector<1x128xf32> to vector<1x32xf32>
    %44 = vector.extract_strided_slice %41 {offsets = [0, 32], sizes = [1, 32], strides = [1, 1]} : vector<1x128xf32> to vector<1x32xf32>
    %45 = vector.extract_strided_slice %42 {offsets = [0, 64], sizes = [1, 32], strides = [1, 1]} : vector<1x128xf32> to vector<1x32xf32>
    %46 = vector.extract_strided_slice %41 {offsets = [0, 96], sizes = [1, 32], strides = [1, 1]} : vector<1x128xf32> to vector<1x32xf32>
    %47 = arith.mulf %44, %14 : vector<1x32xf32>
    %48 = arith.mulf %43, %45 : vector<1x32xf32>
    %49 = arith.addf %47, %48 : vector<1x32xf32>
    %50 = math.tanh %49 : vector<1x32xf32>
    %51 = arith.mulf %46, %50 : vector<1x32xf32>
    %c1 = arith.constant 1 : index
    %c0_26 = arith.constant 0 : index
    %52 = vector.load %arg10[%c1, %c0_26] : memref<8x128xf32, #tpu.memory_space<vmem>>, vector<1x128xf32>
    %cst_27 = arith.constant dense<0.000000e+00> : vector<1x128xf32>
    %53 = tpu.matmul %32, %2, %cst_27 {dimension_numbers = #tpu.dot_dimension_numbers<[1], [0], [0], [1], [0, 0, 1, 1], [], []>} : vector<1x32xf32>, vector<32x128xf32>, vector<1x128xf32> -> vector<1x128xf32>
    %54 = arith.addf %52, %53 : vector<1x128xf32>
    %55 = arith.negf %54 : vector<1x128xf32>
    %56 = math.exp %55 : vector<1x128xf32>
    %cst_28 = arith.constant 1.000000e+00 : f32
    %57 = vector.broadcast %cst_28 : f32 to vector<1x128xf32>
    %58 = arith.addf %57, %56 : vector<1x128xf32>
    %59 = arith.divf %57, %58 : vector<1x128xf32>
    %60 = math.tanh %54 : vector<1x128xf32>
    %61 = vector.extract_strided_slice %59 {offsets = [0, 0], sizes = [1, 32], strides = [1, 1]} : vector<1x128xf32> to vector<1x32xf32>
    %62 = vector.extract_strided_slice %59 {offsets = [0, 32], sizes = [1, 32], strides = [1, 1]} : vector<1x128xf32> to vector<1x32xf32>
    %63 = vector.extract_strided_slice %60 {offsets = [0, 64], sizes = [1, 32], strides = [1, 1]} : vector<1x128xf32> to vector<1x32xf32>
    %64 = vector.extract_strided_slice %59 {offsets = [0, 96], sizes = [1, 32], strides = [1, 1]} : vector<1x128xf32> to vector<1x32xf32>
    %65 = arith.mulf %62, %30 : vector<1x32xf32>
    %66 = arith.mulf %61, %63 : vector<1x32xf32>
    %67 = arith.addf %65, %66 : vector<1x32xf32>
    %68 = math.tanh %67 : vector<1x32xf32>
    %69 = arith.mulf %64, %68 : vector<1x32xf32>
    %cst_29 = arith.constant dense<0.000000e+00> : vector<1x128xf32>
    %70 = tpu.matmul %69, %1, %cst_29 {dimension_numbers = #tpu.dot_dimension_numbers<[1], [0], [0], [1], [0, 0, 1, 1], [], []>} : vector<1x32xf32>, vector<32x128xf32>, vector<1x128xf32> -> vector<1x128xf32>
    %71 = arith.addf %70, %5 : vector<1x128xf32>
    %cst_30 = arith.constant dense<0.000000e+00> : vector<1x128xf32>
    %72 = tpu.matmul %51, %3, %cst_30 {dimension_numbers = #tpu.dot_dimension_numbers<[1], [0], [0], [1], [0, 0, 1, 1], [], []>} : vector<1x32xf32>, vector<32x128xf32>, vector<1x128xf32> -> vector<1x128xf32>
    %73 = arith.addf %71, %72 : vector<1x128xf32>
    %74 = arith.negf %73 : vector<1x128xf32>
    %75 = math.exp %74 : vector<1x128xf32>
    %cst_31 = arith.constant 1.000000e+00 : f32
    %76 = vector.broadcast %cst_31 : f32 to vector<1x128xf32>
    %77 = arith.addf %76, %75 : vector<1x128xf32>
    %78 = arith.divf %76, %77 : vector<1x128xf32>
    %79 = math.tanh %73 : vector<1x128xf32>
    %80 = vector.extract_strided_slice %78 {offsets = [0, 0], sizes = [1, 32], strides = [1, 1]} : vector<1x128xf32> to vector<1x32xf32>
    %81 = vector.extract_strided_slice %78 {offsets = [0, 32], sizes = [1, 32], strides = [1, 1]} : vector<1x128xf32> to vector<1x32xf32>
    %82 = vector.extract_strided_slice %79 {offsets = [0, 64], sizes = [1, 32], strides = [1, 1]} : vector<1x128xf32> to vector<1x32xf32>
    %83 = vector.extract_strided_slice %78 {offsets = [0, 96], sizes = [1, 32], strides = [1, 1]} : vector<1x128xf32> to vector<1x32xf32>
    %84 = arith.mulf %81, %49 : vector<1x32xf32>
    %85 = arith.mulf %80, %82 : vector<1x32xf32>
    %86 = arith.addf %84, %85 : vector<1x32xf32>
    %87 = math.tanh %86 : vector<1x32xf32>
    %88 = arith.mulf %83, %87 : vector<1x32xf32>
    %c2 = arith.constant 2 : index
    %c0_32 = arith.constant 0 : index
    %89 = vector.load %arg10[%c2, %c0_32] : memref<8x128xf32, #tpu.memory_space<vmem>>, vector<1x128xf32>
    %cst_33 = arith.constant dense<0.000000e+00> : vector<1x128xf32>
    %90 = tpu.matmul %69, %2, %cst_33 {dimension_numbers = #tpu.dot_dimension_numbers<[1], [0], [0], [1], [0, 0, 1, 1], [], []>} : vector<1x32xf32>, vector<32x128xf32>, vector<1x128xf32> -> vector<1x128xf32>
    %91 = arith.addf %89, %90 : vector<1x128xf32>
    %92 = arith.negf %91 : vector<1x128xf32>
    %93 = math.exp %92 : vector<1x128xf32>
    %cst_34 = arith.constant 1.000000e+00 : f32
    %94 = vector.broadcast %cst_34 : f32 to vector<1x128xf32>
    %95 = arith.addf %94, %93 : vector<1x128xf32>
    %96 = arith.divf %94, %95 : vector<1x128xf32>
    %97 = math.tanh %91 : vector<1x128xf32>
    %98 = vector.extract_strided_slice %96 {offsets = [0, 0], sizes = [1, 32], strides = [1, 1]} : vector<1x128xf32> to vector<1x32xf32>
    %99 = vector.extract_strided_slice %96 {offsets = [0, 32], sizes = [1, 32], strides = [1, 1]} : vector<1x128xf32> to vector<1x32xf32>
    %100 = vector.extract_strided_slice %97 {offsets = [0, 64], sizes = [1, 32], strides = [1, 1]} : vector<1x128xf32> to vector<1x32xf32>
    %101 = vector.extract_strided_slice %96 {offsets = [0, 96], sizes = [1, 32], strides = [1, 1]} : vector<1x128xf32> to vector<1x32xf32>
    %102 = arith.mulf %99, %67 : vector<1x32xf32>
    %103 = arith.mulf %98, %100 : vector<1x32xf32>
    %104 = arith.addf %102, %103 : vector<1x32xf32>
    %105 = math.tanh %104 : vector<1x32xf32>
    %106 = arith.mulf %101, %105 : vector<1x32xf32>
    %cst_35 = arith.constant dense<0.000000e+00> : vector<1x128xf32>
    %107 = tpu.matmul %106, %1, %cst_35 {dimension_numbers = #tpu.dot_dimension_numbers<[1], [0], [0], [1], [0, 0, 1, 1], [], []>} : vector<1x32xf32>, vector<32x128xf32>, vector<1x128xf32> -> vector<1x128xf32>
    %108 = arith.addf %107, %5 : vector<1x128xf32>
    %cst_36 = arith.constant dense<0.000000e+00> : vector<1x128xf32>
    %109 = tpu.matmul %88, %3, %cst_36 {dimension_numbers = #tpu.dot_dimension_numbers<[1], [0], [0], [1], [0, 0, 1, 1], [], []>} : vector<1x32xf32>, vector<32x128xf32>, vector<1x128xf32> -> vector<1x128xf32>
    %110 = arith.addf %108, %109 : vector<1x128xf32>
    %111 = arith.negf %110 : vector<1x128xf32>
    %112 = math.exp %111 : vector<1x128xf32>
    %cst_37 = arith.constant 1.000000e+00 : f32
    %113 = vector.broadcast %cst_37 : f32 to vector<1x128xf32>
    %114 = arith.addf %113, %112 : vector<1x128xf32>
    %115 = arith.divf %113, %114 : vector<1x128xf32>
    %116 = math.tanh %110 : vector<1x128xf32>
    %117 = vector.extract_strided_slice %115 {offsets = [0, 0], sizes = [1, 32], strides = [1, 1]} : vector<1x128xf32> to vector<1x32xf32>
    %118 = vector.extract_strided_slice %115 {offsets = [0, 32], sizes = [1, 32], strides = [1, 1]} : vector<1x128xf32> to vector<1x32xf32>
    %119 = vector.extract_strided_slice %116 {offsets = [0, 64], sizes = [1, 32], strides = [1, 1]} : vector<1x128xf32> to vector<1x32xf32>
    %120 = vector.extract_strided_slice %115 {offsets = [0, 96], sizes = [1, 32], strides = [1, 1]} : vector<1x128xf32> to vector<1x32xf32>
    %121 = arith.mulf %118, %86 : vector<1x32xf32>
    %122 = arith.mulf %117, %119 : vector<1x32xf32>
    %123 = arith.addf %121, %122 : vector<1x32xf32>
    %124 = math.tanh %123 : vector<1x32xf32>
    %125 = arith.mulf %120, %124 : vector<1x32xf32>
    %c3 = arith.constant 3 : index
    %c0_38 = arith.constant 0 : index
    %126 = vector.load %arg10[%c3, %c0_38] : memref<8x128xf32, #tpu.memory_space<vmem>>, vector<1x128xf32>
    %cst_39 = arith.constant dense<0.000000e+00> : vector<1x128xf32>
    %127 = tpu.matmul %106, %2, %cst_39 {dimension_numbers = #tpu.dot_dimension_numbers<[1], [0], [0], [1], [0, 0, 1, 1], [], []>} : vector<1x32xf32>, vector<32x128xf32>, vector<1x128xf32> -> vector<1x128xf32>
    %128 = arith.addf %126, %127 : vector<1x128xf32>
    %129 = arith.negf %128 : vector<1x128xf32>
    %130 = math.exp %129 : vector<1x128xf32>
    %cst_40 = arith.constant 1.000000e+00 : f32
    %131 = vector.broadcast %cst_40 : f32 to vector<1x128xf32>
    %132 = arith.addf %131, %130 : vector<1x128xf32>
    %133 = arith.divf %131, %132 : vector<1x128xf32>
    %134 = math.tanh %128 : vector<1x128xf32>
    %135 = vector.extract_strided_slice %133 {offsets = [0, 0], sizes = [1, 32], strides = [1, 1]} : vector<1x128xf32> to vector<1x32xf32>
    %136 = vector.extract_strided_slice %133 {offsets = [0, 32], sizes = [1, 32], strides = [1, 1]} : vector<1x128xf32> to vector<1x32xf32>
    %137 = vector.extract_strided_slice %134 {offsets = [0, 64], sizes = [1, 32], strides = [1, 1]} : vector<1x128xf32> to vector<1x32xf32>
    %138 = vector.extract_strided_slice %133 {offsets = [0, 96], sizes = [1, 32], strides = [1, 1]} : vector<1x128xf32> to vector<1x32xf32>
    %139 = arith.mulf %136, %104 : vector<1x32xf32>
    %140 = arith.mulf %135, %137 : vector<1x32xf32>
    %141 = arith.addf %139, %140 : vector<1x32xf32>
    %142 = math.tanh %141 : vector<1x32xf32>
    %143 = arith.mulf %138, %142 : vector<1x32xf32>
    %cst_41 = arith.constant dense<0.000000e+00> : vector<1x128xf32>
    %144 = tpu.matmul %143, %1, %cst_41 {dimension_numbers = #tpu.dot_dimension_numbers<[1], [0], [0], [1], [0, 0, 1, 1], [], []>} : vector<1x32xf32>, vector<32x128xf32>, vector<1x128xf32> -> vector<1x128xf32>
    %145 = arith.addf %144, %5 : vector<1x128xf32>
    %cst_42 = arith.constant dense<0.000000e+00> : vector<1x128xf32>
    %146 = tpu.matmul %125, %3, %cst_42 {dimension_numbers = #tpu.dot_dimension_numbers<[1], [0], [0], [1], [0, 0, 1, 1], [], []>} : vector<1x32xf32>, vector<32x128xf32>, vector<1x128xf32> -> vector<1x128xf32>
    %147 = arith.addf %145, %146 : vector<1x128xf32>
    %148 = arith.negf %147 : vector<1x128xf32>
    %149 = math.exp %148 : vector<1x128xf32>
    %cst_43 = arith.constant 1.000000e+00 : f32
    %150 = vector.broadcast %cst_43 : f32 to vector<1x128xf32>
    %151 = arith.addf %150, %149 : vector<1x128xf32>
    %152 = arith.divf %150, %151 : vector<1x128xf32>
    %153 = math.tanh %147 : vector<1x128xf32>
    %154 = vector.extract_strided_slice %152 {offsets = [0, 0], sizes = [1, 32], strides = [1, 1]} : vector<1x128xf32> to vector<1x32xf32>
    %155 = vector.extract_strided_slice %152 {offsets = [0, 32], sizes = [1, 32], strides = [1, 1]} : vector<1x128xf32> to vector<1x32xf32>
    %156 = vector.extract_strided_slice %153 {offsets = [0, 64], sizes = [1, 32], strides = [1, 1]} : vector<1x128xf32> to vector<1x32xf32>
    %157 = vector.extract_strided_slice %152 {offsets = [0, 96], sizes = [1, 32], strides = [1, 1]} : vector<1x128xf32> to vector<1x32xf32>
    %158 = arith.mulf %155, %123 : vector<1x32xf32>
    %159 = arith.mulf %154, %156 : vector<1x32xf32>
    %160 = arith.addf %158, %159 : vector<1x32xf32>
    %161 = math.tanh %160 : vector<1x32xf32>
    %162 = arith.mulf %157, %161 : vector<1x32xf32>
    %c4 = arith.constant 4 : index
    %c0_44 = arith.constant 0 : index
    %163 = vector.load %arg10[%c4, %c0_44] : memref<8x128xf32, #tpu.memory_space<vmem>>, vector<1x128xf32>
    %cst_45 = arith.constant dense<0.000000e+00> : vector<1x128xf32>
    %164 = tpu.matmul %143, %2, %cst_45 {dimension_numbers = #tpu.dot_dimension_numbers<[1], [0], [0], [1], [0, 0, 1, 1], [], []>} : vector<1x32xf32>, vector<32x128xf32>, vector<1x128xf32> -> vector<1x128xf32>
    %165 = arith.addf %163, %164 : vector<1x128xf32>
    %166 = arith.negf %165 : vector<1x128xf32>
    %167 = math.exp %166 : vector<1x128xf32>
    %cst_46 = arith.constant 1.000000e+00 : f32
    %168 = vector.broadcast %cst_46 : f32 to vector<1x128xf32>
    %169 = arith.addf %168, %167 : vector<1x128xf32>
    %170 = arith.divf %168, %169 : vector<1x128xf32>
    %171 = math.tanh %165 : vector<1x128xf32>
    %172 = vector.extract_strided_slice %170 {offsets = [0, 0], sizes = [1, 32], strides = [1, 1]} : vector<1x128xf32> to vector<1x32xf32>
    %173 = vector.extract_strided_slice %170 {offsets = [0, 32], sizes = [1, 32], strides = [1, 1]} : vector<1x128xf32> to vector<1x32xf32>
    %174 = vector.extract_strided_slice %171 {offsets = [0, 64], sizes = [1, 32], strides = [1, 1]} : vector<1x128xf32> to vector<1x32xf32>
    %175 = vector.extract_strided_slice %170 {offsets = [0, 96], sizes = [1, 32], strides = [1, 1]} : vector<1x128xf32> to vector<1x32xf32>
    %176 = arith.mulf %173, %141 : vector<1x32xf32>
    %177 = arith.mulf %172, %174 : vector<1x32xf32>
    %178 = arith.addf %176, %177 : vector<1x32xf32>
    %179 = math.tanh %178 : vector<1x32xf32>
    %180 = arith.mulf %175, %179 : vector<1x32xf32>
    %cst_47 = arith.constant dense<0.000000e+00> : vector<1x128xf32>
    %181 = tpu.matmul %180, %1, %cst_47 {dimension_numbers = #tpu.dot_dimension_numbers<[1], [0], [0], [1], [0, 0, 1, 1], [], []>} : vector<1x32xf32>, vector<32x128xf32>, vector<1x128xf32> -> vector<1x128xf32>
    %182 = arith.addf %181, %5 : vector<1x128xf32>
    %cst_48 = arith.constant dense<0.000000e+00> : vector<1x128xf32>
    %183 = tpu.matmul %162, %3, %cst_48 {dimension_numbers = #tpu.dot_dimension_numbers<[1], [0], [0], [1], [0, 0, 1, 1], [], []>} : vector<1x32xf32>, vector<32x128xf32>, vector<1x128xf32> -> vector<1x128xf32>
    %184 = arith.addf %182, %183 : vector<1x128xf32>
    %185 = arith.negf %184 : vector<1x128xf32>
    %186 = math.exp %185 : vector<1x128xf32>
    %cst_49 = arith.constant 1.000000e+00 : f32
    %187 = vector.broadcast %cst_49 : f32 to vector<1x128xf32>
    %188 = arith.addf %187, %186 : vector<1x128xf32>
    %189 = arith.divf %187, %188 : vector<1x128xf32>
    %190 = math.tanh %184 : vector<1x128xf32>
    %191 = vector.extract_strided_slice %189 {offsets = [0, 0], sizes = [1, 32], strides = [1, 1]} : vector<1x128xf32> to vector<1x32xf32>
    %192 = vector.extract_strided_slice %189 {offsets = [0, 32], sizes = [1, 32], strides = [1, 1]} : vector<1x128xf32> to vector<1x32xf32>
    %193 = vector.extract_strided_slice %190 {offsets = [0, 64], sizes = [1, 32], strides = [1, 1]} : vector<1x128xf32> to vector<1x32xf32>
    %194 = vector.extract_strided_slice %189 {offsets = [0, 96], sizes = [1, 32], strides = [1, 1]} : vector<1x128xf32> to vector<1x32xf32>
    %195 = arith.mulf %192, %160 : vector<1x32xf32>
    %196 = arith.mulf %191, %193 : vector<1x32xf32>
    %197 = arith.addf %195, %196 : vector<1x32xf32>
    %198 = math.tanh %197 : vector<1x32xf32>
    %199 = arith.mulf %194, %198 : vector<1x32xf32>
    %c5 = arith.constant 5 : index
    %c0_50 = arith.constant 0 : index
    %200 = vector.load %arg10[%c5, %c0_50] : memref<8x128xf32, #tpu.memory_space<vmem>>, vector<1x128xf32>
    %cst_51 = arith.constant dense<0.000000e+00> : vector<1x128xf32>
    %201 = tpu.matmul %180, %2, %cst_51 {dimension_numbers = #tpu.dot_dimension_numbers<[1], [0], [0], [1], [0, 0, 1, 1], [], []>} : vector<1x32xf32>, vector<32x128xf32>, vector<1x128xf32> -> vector<1x128xf32>
    %202 = arith.addf %200, %201 : vector<1x128xf32>
    %203 = arith.negf %202 : vector<1x128xf32>
    %204 = math.exp %203 : vector<1x128xf32>
    %cst_52 = arith.constant 1.000000e+00 : f32
    %205 = vector.broadcast %cst_52 : f32 to vector<1x128xf32>
    %206 = arith.addf %205, %204 : vector<1x128xf32>
    %207 = arith.divf %205, %206 : vector<1x128xf32>
    %208 = math.tanh %202 : vector<1x128xf32>
    %209 = vector.extract_strided_slice %207 {offsets = [0, 0], sizes = [1, 32], strides = [1, 1]} : vector<1x128xf32> to vector<1x32xf32>
    %210 = vector.extract_strided_slice %207 {offsets = [0, 32], sizes = [1, 32], strides = [1, 1]} : vector<1x128xf32> to vector<1x32xf32>
    %211 = vector.extract_strided_slice %208 {offsets = [0, 64], sizes = [1, 32], strides = [1, 1]} : vector<1x128xf32> to vector<1x32xf32>
    %212 = vector.extract_strided_slice %207 {offsets = [0, 96], sizes = [1, 32], strides = [1, 1]} : vector<1x128xf32> to vector<1x32xf32>
    %213 = arith.mulf %210, %178 : vector<1x32xf32>
    %214 = arith.mulf %209, %211 : vector<1x32xf32>
    %215 = arith.addf %213, %214 : vector<1x32xf32>
    %216 = math.tanh %215 : vector<1x32xf32>
    %217 = arith.mulf %212, %216 : vector<1x32xf32>
    %cst_53 = arith.constant dense<0.000000e+00> : vector<1x128xf32>
    %218 = tpu.matmul %217, %1, %cst_53 {dimension_numbers = #tpu.dot_dimension_numbers<[1], [0], [0], [1], [0, 0, 1, 1], [], []>} : vector<1x32xf32>, vector<32x128xf32>, vector<1x128xf32> -> vector<1x128xf32>
    %219 = arith.addf %218, %5 : vector<1x128xf32>
    %cst_54 = arith.constant dense<0.000000e+00> : vector<1x128xf32>
    %220 = tpu.matmul %199, %3, %cst_54 {dimension_numbers = #tpu.dot_dimension_numbers<[1], [0], [0], [1], [0, 0, 1, 1], [], []>} : vector<1x32xf32>, vector<32x128xf32>, vector<1x128xf32> -> vector<1x128xf32>
    %221 = arith.addf %219, %220 : vector<1x128xf32>
    %222 = arith.negf %221 : vector<1x128xf32>
    %223 = math.exp %222 : vector<1x128xf32>
    %cst_55 = arith.constant 1.000000e+00 : f32
    %224 = vector.broadcast %cst_55 : f32 to vector<1x128xf32>
    %225 = arith.addf %224, %223 : vector<1x128xf32>
    %226 = arith.divf %224, %225 : vector<1x128xf32>
    %227 = math.tanh %221 : vector<1x128xf32>
    %228 = vector.extract_strided_slice %226 {offsets = [0, 0], sizes = [1, 32], strides = [1, 1]} : vector<1x128xf32> to vector<1x32xf32>
    %229 = vector.extract_strided_slice %226 {offsets = [0, 32], sizes = [1, 32], strides = [1, 1]} : vector<1x128xf32> to vector<1x32xf32>
    %230 = vector.extract_strided_slice %227 {offsets = [0, 64], sizes = [1, 32], strides = [1, 1]} : vector<1x128xf32> to vector<1x32xf32>
    %231 = vector.extract_strided_slice %226 {offsets = [0, 96], sizes = [1, 32], strides = [1, 1]} : vector<1x128xf32> to vector<1x32xf32>
    %232 = arith.mulf %229, %197 : vector<1x32xf32>
    %233 = arith.mulf %228, %230 : vector<1x32xf32>
    %234 = arith.addf %232, %233 : vector<1x32xf32>
    %235 = math.tanh %234 : vector<1x32xf32>
    %236 = arith.mulf %231, %235 : vector<1x32xf32>
    %c6 = arith.constant 6 : index
    %c0_56 = arith.constant 0 : index
    %237 = vector.load %arg10[%c6, %c0_56] : memref<8x128xf32, #tpu.memory_space<vmem>>, vector<1x128xf32>
    %cst_57 = arith.constant dense<0.000000e+00> : vector<1x128xf32>
    %238 = tpu.matmul %217, %2, %cst_57 {dimension_numbers = #tpu.dot_dimension_numbers<[1], [0], [0], [1], [0, 0, 1, 1], [], []>} : vector<1x32xf32>, vector<32x128xf32>, vector<1x128xf32> -> vector<1x128xf32>
    %239 = arith.addf %237, %238 : vector<1x128xf32>
    %240 = arith.negf %239 : vector<1x128xf32>
    %241 = math.exp %240 : vector<1x128xf32>
    %cst_58 = arith.constant 1.000000e+00 : f32
    %242 = vector.broadcast %cst_58 : f32 to vector<1x128xf32>
    %243 = arith.addf %242, %241 : vector<1x128xf32>
    %244 = arith.divf %242, %243 : vector<1x128xf32>
    %245 = math.tanh %239 : vector<1x128xf32>
    %246 = vector.extract_strided_slice %244 {offsets = [0, 0], sizes = [1, 32], strides = [1, 1]} : vector<1x128xf32> to vector<1x32xf32>
    %247 = vector.extract_strided_slice %244 {offsets = [0, 32], sizes = [1, 32], strides = [1, 1]} : vector<1x128xf32> to vector<1x32xf32>
    %248 = vector.extract_strided_slice %245 {offsets = [0, 64], sizes = [1, 32], strides = [1, 1]} : vector<1x128xf32> to vector<1x32xf32>
    %249 = vector.extract_strided_slice %244 {offsets = [0, 96], sizes = [1, 32], strides = [1, 1]} : vector<1x128xf32> to vector<1x32xf32>
    %250 = arith.mulf %247, %215 : vector<1x32xf32>
    %251 = arith.mulf %246, %248 : vector<1x32xf32>
    %252 = arith.addf %250, %251 : vector<1x32xf32>
    %253 = math.tanh %252 : vector<1x32xf32>
    %254 = arith.mulf %249, %253 : vector<1x32xf32>
    %cst_59 = arith.constant dense<0.000000e+00> : vector<1x128xf32>
    %255 = tpu.matmul %254, %1, %cst_59 {dimension_numbers = #tpu.dot_dimension_numbers<[1], [0], [0], [1], [0, 0, 1, 1], [], []>} : vector<1x32xf32>, vector<32x128xf32>, vector<1x128xf32> -> vector<1x128xf32>
    %256 = arith.addf %255, %5 : vector<1x128xf32>
    %cst_60 = arith.constant dense<0.000000e+00> : vector<1x128xf32>
    %257 = tpu.matmul %236, %3, %cst_60 {dimension_numbers = #tpu.dot_dimension_numbers<[1], [0], [0], [1], [0, 0, 1, 1], [], []>} : vector<1x32xf32>, vector<32x128xf32>, vector<1x128xf32> -> vector<1x128xf32>
    %258 = arith.addf %256, %257 : vector<1x128xf32>
    %259 = arith.negf %258 : vector<1x128xf32>
    %260 = math.exp %259 : vector<1x128xf32>
    %cst_61 = arith.constant 1.000000e+00 : f32
    %261 = vector.broadcast %cst_61 : f32 to vector<1x128xf32>
    %262 = arith.addf %261, %260 : vector<1x128xf32>
    %263 = arith.divf %261, %262 : vector<1x128xf32>
    %264 = math.tanh %258 : vector<1x128xf32>
    %265 = vector.extract_strided_slice %263 {offsets = [0, 0], sizes = [1, 32], strides = [1, 1]} : vector<1x128xf32> to vector<1x32xf32>
    %266 = vector.extract_strided_slice %263 {offsets = [0, 32], sizes = [1, 32], strides = [1, 1]} : vector<1x128xf32> to vector<1x32xf32>
    %267 = vector.extract_strided_slice %264 {offsets = [0, 64], sizes = [1, 32], strides = [1, 1]} : vector<1x128xf32> to vector<1x32xf32>
    %268 = vector.extract_strided_slice %263 {offsets = [0, 96], sizes = [1, 32], strides = [1, 1]} : vector<1x128xf32> to vector<1x32xf32>
    %269 = arith.mulf %266, %234 : vector<1x32xf32>
    %270 = arith.mulf %265, %267 : vector<1x32xf32>
    %271 = arith.addf %269, %270 : vector<1x32xf32>
    %272 = math.tanh %271 : vector<1x32xf32>
    %273 = arith.mulf %268, %272 : vector<1x32xf32>
    %c7 = arith.constant 7 : index
    %c0_62 = arith.constant 0 : index
    %274 = vector.load %arg10[%c7, %c0_62] : memref<8x128xf32, #tpu.memory_space<vmem>>, vector<1x128xf32>
    %cst_63 = arith.constant dense<0.000000e+00> : vector<1x128xf32>
    %275 = tpu.matmul %254, %2, %cst_63 {dimension_numbers = #tpu.dot_dimension_numbers<[1], [0], [0], [1], [0, 0, 1, 1], [], []>} : vector<1x32xf32>, vector<32x128xf32>, vector<1x128xf32> -> vector<1x128xf32>
    %276 = arith.addf %274, %275 : vector<1x128xf32>
    %277 = arith.negf %276 : vector<1x128xf32>
    %278 = math.exp %277 : vector<1x128xf32>
    %cst_64 = arith.constant 1.000000e+00 : f32
    %279 = vector.broadcast %cst_64 : f32 to vector<1x128xf32>
    %280 = arith.addf %279, %278 : vector<1x128xf32>
    %281 = arith.divf %279, %280 : vector<1x128xf32>
    %282 = math.tanh %276 : vector<1x128xf32>
    %283 = vector.extract_strided_slice %281 {offsets = [0, 0], sizes = [1, 32], strides = [1, 1]} : vector<1x128xf32> to vector<1x32xf32>
    %284 = vector.extract_strided_slice %281 {offsets = [0, 32], sizes = [1, 32], strides = [1, 1]} : vector<1x128xf32> to vector<1x32xf32>
    %285 = vector.extract_strided_slice %282 {offsets = [0, 64], sizes = [1, 32], strides = [1, 1]} : vector<1x128xf32> to vector<1x32xf32>
    %286 = vector.extract_strided_slice %281 {offsets = [0, 96], sizes = [1, 32], strides = [1, 1]} : vector<1x128xf32> to vector<1x32xf32>
    %287 = arith.mulf %284, %252 : vector<1x32xf32>
    %288 = arith.mulf %283, %285 : vector<1x32xf32>
    %289 = arith.addf %287, %288 : vector<1x32xf32>
    %290 = math.tanh %289 : vector<1x32xf32>
    %291 = arith.mulf %286, %290 : vector<1x32xf32>
    %cst_65 = arith.constant dense<0.000000e+00> : vector<1x128xf32>
    %292 = tpu.matmul %291, %1, %cst_65 {dimension_numbers = #tpu.dot_dimension_numbers<[1], [0], [0], [1], [0, 0, 1, 1], [], []>} : vector<1x32xf32>, vector<32x128xf32>, vector<1x128xf32> -> vector<1x128xf32>
    %293 = arith.addf %292, %5 : vector<1x128xf32>
    %cst_66 = arith.constant dense<0.000000e+00> : vector<1x128xf32>
    %294 = tpu.matmul %273, %3, %cst_66 {dimension_numbers = #tpu.dot_dimension_numbers<[1], [0], [0], [1], [0, 0, 1, 1], [], []>} : vector<1x32xf32>, vector<32x128xf32>, vector<1x128xf32> -> vector<1x128xf32>
    %295 = arith.addf %293, %294 : vector<1x128xf32>
    %296 = arith.negf %295 : vector<1x128xf32>
    %297 = math.exp %296 : vector<1x128xf32>
    %cst_67 = arith.constant 1.000000e+00 : f32
    %298 = vector.broadcast %cst_67 : f32 to vector<1x128xf32>
    %299 = arith.addf %298, %297 : vector<1x128xf32>
    %300 = arith.divf %298, %299 : vector<1x128xf32>
    %301 = math.tanh %295 : vector<1x128xf32>
    %302 = vector.extract_strided_slice %300 {offsets = [0, 0], sizes = [1, 32], strides = [1, 1]} : vector<1x128xf32> to vector<1x32xf32>
    %303 = vector.extract_strided_slice %300 {offsets = [0, 32], sizes = [1, 32], strides = [1, 1]} : vector<1x128xf32> to vector<1x32xf32>
    %304 = vector.extract_strided_slice %301 {offsets = [0, 64], sizes = [1, 32], strides = [1, 1]} : vector<1x128xf32> to vector<1x32xf32>
    %305 = vector.extract_strided_slice %300 {offsets = [0, 96], sizes = [1, 32], strides = [1, 1]} : vector<1x128xf32> to vector<1x32xf32>
    %306 = arith.mulf %303, %271 : vector<1x32xf32>
    %307 = arith.mulf %302, %304 : vector<1x32xf32>
    %308 = arith.addf %306, %307 : vector<1x32xf32>
    %309 = math.tanh %308 : vector<1x32xf32>
    %310 = arith.mulf %305, %309 : vector<1x32xf32>
    %c0_68 = arith.constant 0 : index
    %c0_69 = arith.constant 0 : index
    %311 = vector.load %arg7[%c0_68, %c0_69] : memref<32x4xf32, #tpu.memory_space<vmem>>, vector<32x4xf32>
    %c0_70 = arith.constant 0 : index
    %c0_71 = arith.constant 0 : index
    %312 = vector.load %arg8[%c0_70, %c0_71] : memref<1x4xf32, #tpu.memory_space<vmem>>, vector<1x4xf32>
    %cst_72 = arith.constant dense<0.000000e+00> : vector<1x4xf32>
    %313 = tpu.matmul %310, %311, %cst_72 {dimension_numbers = #tpu.dot_dimension_numbers<[1], [0], [0], [1], [0, 0, 1, 1], [], []>} : vector<1x32xf32>, vector<32x4xf32>, vector<1x4xf32> -> vector<1x4xf32>
    %314 = arith.addf %313, %312 : vector<1x4xf32>
    %c0_73 = arith.constant 0 : index
    %c0_74 = arith.constant 0 : index
    %315 = vector.load %arg9[%c0_73, %c0_74] : memref<1x4xf32, #tpu.memory_space<vmem>>, vector<1x4xf32>
    tpu.vector_store %arg9[%c0_73, %c0_74], %314 {strides = array<i32>} : memref<1x4xf32, #tpu.memory_space<vmem>>, vector<1x4xf32>,
    return
  }
}

</mosaic_0001>

<bundles_post_ra>
// kernel: tpu_custom_call.1
= control target key start
LH: loop header
LB: loop body
LE: loop exit
PB: predicated region body
PF: predicated region fallthrough
CT: control target
= control target key end

     0   :  { %14 = vsyncpa [#allocation4], 0  ;;  %s3773_s0 = inlined_call_operand.vmem [shape: f32[8,16], index: 0, kind: input, shape index: {}]   ;;  %s3774_s1 = inlined_call_operand.hbm [shape: f32[16,128], index: 1, kind: input, shape index: {}]   ;;  %s3775_s2 = inlined_call_operand.vmem [shape: f32[32,128], index: 2, kind: input, shape index: {}]   ;;  %s3776_s3 = inlined_call_operand.vmem [shape: f32[1,128], index: 3, kind: input, shape index: {}]   ;;  %s3777_s4 = inlined_call_operand.hbm [shape: f32[32,128], index: 4, kind: input, shape index: {}]   ;;  %s3778_s5 = inlined_call_operand.hbm [shape: f32[32,128], index: 5, kind: input, shape index: {}]   ;;  %s3779_s6 = inlined_call_operand.vmem [shape: f32[1,128], index: 6, kind: input, shape index: {}]   ;;  %s3780_s7 = inlined_call_operand.vmem [shape: f32[32,4], index: 7, kind: input, shape index: {}]   ;;  %s3781_s8 = inlined_call_operand.vmem [shape: f32[1,4], index: 8, kind: input, shape index: {}]   ;;  %s3782_s9 = inlined_call_operand.hbm [shape: f32[1,4], index: 9, kind: output, shape index: {}]  }
   0x1   :  { %15 = vsyncpa [#allocation7], 0 }
   0x2   :  { %16 = vsyncpa [#allocation5], 0  ;;  %s3298_s30 = smov [#allocation6]   ;;  %s3299_s11 = smov [#allocation3]  }
   0x3   :  { %s40_s10 = sshll.u32 %s3298_s30, 4  ;;  %s24_s12 = sshll.u32 %s3299_s11, 4  ;;  %s41_s10 = int_to_ptr.vmem [resolvable:$true] %s40_s10  ;;  %s3359_s12 = int_to_ptr.vmem [resolvable:$true] %s24_s12 }
   0x4   :  { %s3204_s15 = scalar_lea.hbm %s3777_s4, 512 }
   0x5   :  { %p3205_p0 = scmp.ne.s32.totalorder %s3777_s4, %s3204_s15  ;;  %p3208_p1 = scmp.lt.u32.totalorder %s3204_s15, %s3777_s4 }
   0x7   :  { %p3210_p2 = pnand %p3208_p1, %p3205_p0 }
   0x9   :  { %3213 = shalt.err (!%p3210_p2)
}
   0xa   :  { %s3214_s20 = scalar_lea.vmem %s41_s10, 512  ;;  %p3219_p4 = scmp.lt.s32.totalorder %s41_s10, %s41_s10 }
   0xb   :  { %p3215_p3 = scmp.ne.s32.totalorder %s41_s10, %s3214_s20  ;;  %p3220_p5 = scmp.lt.s32.totalorder %s3214_s20, %s3214_s20 }
   0xd   :  { %p3221_p6 = por %p3220_p5, %p3219_p4 }
   0xf   :  { %p3222_p7 = pnand %p3221_p6, %p3215_p3 }
  0x11   :  { %3225 = shalt.err (!%p3222_p7)
}
  0x12   :  { %s3300_s21 = smov 128   ;;  %s3301_s22 = smov 8  }
  0x13   :  { %46 = dma.hbm_to_vmem [thread:$0]  %s3777_s4, 512, %s41_s10, [#allocation7], %s3300_s21, %s3300_s21, %s3301_s22  }
  0x14   :  { %s3226_s27 = scalar_lea.hbm %s3774_s1, 256 }
  0x15   :  { %p3227_p8 = scmp.ne.s32.totalorder %s3774_s1, %s3226_s27  ;;  %p3230_p9 = scmp.lt.u32.totalorder %s3226_s27, %s3774_s1 }
  0x17   :  { %p3232_p10 = pnand %p3230_p9, %p3227_p8 }
  0x19   :  { %3235 = shalt.err (!%p3232_p10)
}
  0x1a   :  { %s3236_s13 = scalar_lea.vmem %s3359_s12, 256  ;;  %p3241_p12 = scmp.lt.s32.totalorder %s3359_s12, %s3359_s12 }
  0x1b   :  { %p3237_p11 = scmp.ne.s32.totalorder %s3359_s12, %s3236_s13  ;;  %p3242_p13 = scmp.lt.s32.totalorder %s3236_s13, %s3236_s13 }
  0x1d   :  { %p3243_p0 = por %p3242_p13, %p3241_p12 }
  0x1f   :  { %p3244_p1 = pnand %p3243_p0, %p3237_p11 }
  0x21   :  { %3247 = shalt.err (!%p3244_p1)
}
  0x22   :  { %30 = dma.hbm_to_vmem [thread:$0]  %s3774_s1, 256, %s3359_s12, [#allocation4], %s3300_s21, %s3300_s21, %s3301_s22  }
  0x23   :  { %s3302_s14 = smov [#allocation8]   ;;  %s3248_s18 = scalar_lea.hbm %s3778_s5, 512 }
  0x24   :  { %s52_s15 = sshll.u32 %s3302_s14, 4  ;;  %p3249_p2 = scmp.ne.s32.totalorder %s3778_s5, %s3248_s18  ;;  %s53_s15 = int_to_ptr.vmem [resolvable:$true] %s52_s15 }
  0x25   :  { %p3252_p3 = scmp.lt.u32.totalorder %s3248_s18, %s3778_s5 }
  0x27   :  { %p3254_p4 = pnand %p3252_p3, %p3249_p2 }
  0x29   :  { %3257 = shalt.err (!%p3254_p4)
}
  0x2a   :  { %s3258_s25 = scalar_lea.vmem %s53_s15, 512  ;;  %p3263_p6 = scmp.lt.s32.totalorder %s53_s15, %s53_s15 }
  0x2b   :  { %p3259_p5 = scmp.ne.s32.totalorder %s53_s15, %s3258_s25  ;;  %p3264_p7 = scmp.lt.s32.totalorder %s3258_s25, %s3258_s25 }
  0x2d   :  { %p3265_p8 = por %p3264_p7, %p3263_p6 }
  0x2f   :  { %p3266_p9 = pnand %p3265_p8, %p3259_p5 }
  0x31   :  { %3269 = shalt.err (!%p3266_p9)
}
  0x32   :  { %58 = dma.hbm_to_vmem [thread:$0]  %s3778_s5, 512, %s53_s15, [#allocation7], %s3300_s21, %s3300_s21, %s3301_s22  }
  0x33   :  { %3292 = dma.done.wait [#allocation4], 256  }
  0x34   :  { %3293 = vsyncadd [#allocation4], 4294967040 }
  0x35   :  { %3294 = dma.done.wait [#allocation7], 1024  }
  0x36   :  { %3295 = vsyncadd [#allocation7], 4294966272  ;;  %v3303_v0 = vmov 0.0|0.0   ;;  %vm3304_vm0 = vmmov 0   ;;  %v3305_v1 = vmov 0.0   ;;  %v74_v2 = vld [vmem:[#allocation3] sm:$0xff] }
  0x37   :  { %2888 = vmatprep.subr.bf16.mxu0 %v3303_v0  ;;  %2610 = vmatprep.mubr.msk.f32.mxu0 %vm3304_vm0, %v3305_v1  ;;  %v75_v3 = vld [vmem:[#allocation3 + $0x8] sm:$0xff]  ;;  %v80_v5 = vld [vmem:[%s3775_s2] sm:$0xff]  ;;  %v81_v6 = vld [vmem:[%s3775_s2 + $0x8] sm:$0xff]  ;;  %vm97_vm1 = vcmask 130048   ;;  %s3306_s4 = smov 64   ;;  %vm173_vm2 = vcmask 261120  }
  0x38   :  { %2891 = vmatprep.subr.bf16.mxu1 %v3303_v0  ;;  %2621 = vmatprep.mubr.msk.f32.mxu1 %vm3304_vm0, %v3305_v1  ;;  %v2889_v4 = vpack.c.bf16 %v75_v3, %v74_v2  ;;  %v82_v7 = vld [vmem:[%s3775_s2 + $0x10] sm:$0xff]  ;;  %v3426_v8 = vpack.c.bf16 %v81_v6, %v80_v5  ;;  %v83_v9 = vld [vmem:[%s3775_s2 + $0x18] sm:$0xff]  ;;  %v90_v10 = vld [vmem:[%s3773_s0] sm:$0xff]  ;;  %vm2419_vm3 = vcmask 24576  }
  0x39   :  { %v3435_v11 = vpack.c.bf16 %v83_v9, %v82_v7  ;;  %v2437_v12 = vld [vmem:[%s3776_s3] ss:$0 sm:$0xff]  ;;  %s3307_s3 = smov 32   ;;  %v76_v30 = vld [vmem:[#allocation6] sm:$0xff]  ;;  %v78_v32 = vld [vmem:[#allocation6 + $0x10] sm:$0xff] }
  0x3a   :  { %2890 = vmatpush3.bf16.msra.mxu0 %v2889_v4  ;;  %2893 = vmatpush3.bf16.msra.mxu1 %v3426_v8  ;;  %v77_v31 = vld [vmem:[#allocation6 + $0x8] sm:$0xff]  ;;  %v79_v34 = vld [vmem:[#allocation6 + $0x18] sm:$0xff]  ;;  %v84_v39 = vld [vmem:[#allocation8] sm:$0xff] }
  0x3b   :  { %2897 = vmatprep.subr.bf16.mxu0 %v3303_v0  ;;  %2894 = vmatprep.subr.bf16.mxu1 %v3303_v0  ;;  %v3458_v33 = vpack.c.bf16 %v77_v31, %v76_v30  ;;  %v3461_v35 = vpack.c.bf16 %v79_v34, %v78_v32  ;;  %v85_v40 = vld [vmem:[#allocation8 + $0x8] sm:$0xff]  ;;  %v86_v42 = vld [vmem:[#allocation8 + $0x10] sm:$0xff]  ;;  %v87_v43 = vld [vmem:[#allocation8 + $0x18] sm:$0xff] }
  0x3c   :  { %v3468_v41 = vpack.c.bf16 %v85_v40, %v84_v39  ;;  %v3473_v45 = vpack.c.bf16 %v87_v43, %v86_v42  ;;  %v3496_v50 = vld [vmem:[%s3779_s6] sm:$0x1] }
  0x3d   :  { %2611 = vmatmul.mubr.msk.f32.vlgmr.msra.gmra.mrb[0].mxu0 %vm97_vm1, %v90_v10 }
  0x3e   :  { %2632 = vmatprep.mubr.msk.f32.mxu0 %vm3304_vm0, %v3305_v1  ;;  %2896 = vmatpush3.bf16.msra.mxu1 %v3435_v11 }
  0x3f   :  { %2909 = vmatprep.subr.bf16.mxu1 %v3303_v0  ;;  %2899 = vmatpush3.bf16.msra.mxu0 %v3458_v33 }
  0x40   :  { %2900 = vmatprep.subr.bf16.mxu0 %v3303_v0 }
  0x41   :  { %2622 = vmatmul.mubr.f32.vlgmr.msra.gmra.mrb[0].mxu1 %v3305_v1 }
  0x42   :  { %2911 = vmatpush3.bf16.msra.mxu1 %v3426_v8  ;;  %2654 = vmatprep.mubr.msk.f32.mxu1 %vm3304_vm0, %v3305_v1 }
  0x43   :  { %2912 = vmatprep.subr.bf16.mxu1 %v3303_v0  ;;  %2902 = vmatpush3.bf16.msra.mxu0 %v3461_v35 }
  0x44   :  { %2903 = vmatprep.subr.bf16.mxu0 %v3303_v0 }
  0x46   :  { %2914 = vmatpush3.bf16.msra.mxu1 %v3435_v11 }
  0x47   :  { %2915 = vmatprep.subr.bf16.mxu1 %v3303_v0 }
 0x110   :  { %v167_v13 = vpop.f32.mrb[0].mxu0 }
 0x111   :  { %v168_v14 = vadd.f32 %v2437_v12, %v167_v13  ;;  %v2612_v15 = vpop.f32.mrb[1].mxu0 }
 0x113   :  { %171 = vst [vmem:[#allocation2] sm:$0xff] %v168_v14 }
 0x114   :  { %v243_v16 = vpop.f32.mrb[0].mxu1 }
 0x115   :  { %v2623_v17 = vpop.f32.mrb[1].mxu1 }
 0x11a   :  { %v172_v18 = vld [vmem:[#allocation2] sm:$0x1]  ;;  %v442_v46 = vld [vmem:[#allocation2 + $0x1] sm:$0x1] }
 0x11b   :  { %v247_v19 = vadd.f32 %v243_v16, %v172_v18 }
 0x11d   :  { %3076 = vtanh.f32 %v247_v19  ;;  %v2439_v21 = vmul.f32 -1.442695, %v247_v19 }
 0x11f   :  { %3078 = vpow2.f32 %v2439_v21 }
 0x127   :  { %v3077_v20 = vpop.eup %3076 }
 0x128   :  { %257 = vrot.lane.b32.xlu0 %v3077_v20, %s3306_s4 }
 0x129   :  { %v3079_v22 = vpop.eup %3078 }
 0x12a   :  { %v251_v23 = vadd.f32 1.0, %v3079_v22  ;;  %v713_v22 = vld [vmem:[#allocation2 + $0x2] sm:$0x1] }
 0x12c   :  { %3080 = vrcp.f32 %v251_v23 }
 0x136   :  { %v3081_v24 = vpop.eup %3080 }
 0x137   :  { %v255_v27 = vmul.f32 0.0, %v3081_v24 }
 0x19a   :  { %v258_v25 = vpop.permute.xlu0 %257 }
 0x19b   :  { %v260_v26 = vmul.f32 %v3081_v24, %v258_v25 }
 0x19d   :  { %262 = vrot.lane.b32.xlu0 %v260_v26, %s3307_s3 }
 0x20f   :  { %v263_v28 = vpop.permute.xlu0 %262 }
 0x210   :  { %v3455_v29 = vadd.f32 %v263_v28, %v255_v27 }
 0x212   :  { %3082 = vtanh.f32 %v3455_v29 }
 0x21c   :  { %v3083_v36 = vpop.eup %3082 }
 0x21d   :  { %268 = vrot.lane.b32.xlu1 %v3083_v36, %s3306_s4 }
 0x28f   :  { %v269_v37 = vpop.permute.xlu1 %268 }
 0x290   :  { %v271_v38 = vmul.f32 %v3081_v24, %v269_v37 }
 0x292   :  { %273 = vrot.lane.b32.xlu1 %v271_v38, %s3307_s3 }
 0x304   :  { %v274_v44 = vpop.permute.xlu1 %273 }
 0x305   :  { %2633 = vmatmul.mubr.msk.f32.vlgmr.msra.gmra.mrb[2].mxu0 %vm173_vm2, %v274_v44  ;;  %2655 = vmatmul.mubr.msk.f32.vlgmr.msra.gmra.mrb[2].mxu1 %vm173_vm2, %v274_v44 }
 0x306   :  { %2905 = vmatpush3.bf16.msra.mxu0 %v3468_v41  ;;  %2643 = vmatprep.mubr.msk.f32.mxu0 %vm3304_vm0, %v3305_v1 }
 0x307   :  { %2906 = vmatprep.subr.bf16.mxu0 %v3303_v0  ;;  %2917 = vmatpush3.bf16.msra.mxu1 %v3458_v33 }
 0x308   :  { %2918 = vmatprep.subr.bf16.mxu1 %v3303_v0  ;;  %2665 = vmatprep.mubr.msk.f32.mxu1 %vm3304_vm0, %v3305_v1 }
 0x30a   :  { %2908 = vmatpush3.bf16.msra.mxu0 %v3473_v45 }
 0x30b   :  { %2927 = vmatprep.subr.bf16.mxu0 %v3303_v0  ;;  %2920 = vmatpush3.bf16.msra.mxu1 %v3461_v35 }
 0x30c   :  { %2921 = vmatprep.subr.bf16.mxu1 %v3303_v0 }
 0x30d   :  { %2644 = vmatmul.mubr.f32.vlgmr.msra.gmra.mrb[2].mxu0 %v3305_v1 }
 0x30e   :  { %2929 = vmatpush3.bf16.msra.mxu0 %v3426_v8  ;;  %2687 = vmatprep.mubr.msk.f32.mxu0 %vm3304_vm0, %v3305_v1 }
 0x30f   :  { %2930 = vmatprep.subr.bf16.mxu0 %v3303_v0 }
 0x312   :  { %2932 = vmatpush3.bf16.msra.mxu0 %v3435_v11 }
 0x313   :  { %2933 = vmatprep.subr.bf16.mxu0 %v3303_v0 }
 0x3d8   :  { %v509_v47 = vpop.f32.mrb[2].mxu1 }
 0x3d9   :  { %v513_v48 = vadd.f32 %v509_v47, %v442_v46  ;;  %v2656_v49 = vpop.f32.mrb[3].mxu1 }
 0x3db   :  { %3084 = vtanh.f32 %v513_v48  ;;  %v2443_v56 = vmul.f32 -1.442695, %v513_v48 }
 0x3e0   :  { %v413_v51 = vpop.f32.mrb[2].mxu0 }
 0x3e1   :  { %v3041_v52 = vadd.f32 %v413_v51, %v3496_v50  ;;  %v2645_v53 = vpop.f32.mrb[3].mxu0 }
 0x3e3   :  { %3086 = vtanh.f32 %v3041_v52  ;;  %v2441_v57 = vmul.f32 -1.442695, %v3041_v52 }
 0x3e4   :  { %3088 = vpow2.f32 %v2443_v56 }
 0x3e5   :  { %v3085_v54 = vpop.eup %3084  ;;  %3090 = vpow2.f32 %v2441_v57 }
 0x3e6   :  { %523 = vrot.lane.b32.xlu0 %v3085_v54, %s3306_s4 }
 0x3ed   :  { %v3087_v55 = vpop.eup %3086 }
 0x3ee   :  { %427 = vrot.lane.b32.xlu1 %v3087_v55, %s3306_s4  ;;  %v3089_v58 = vpop.eup %3088 }
 0x3ef   :  { %v517_v59 = vadd.f32 1.0, %v3089_v58  ;;  %v3091_v60 = vpop.eup %3090 }
 0x3f0   :  { %v421_v61 = vadd.f32 1.0, %v3091_v60 }
 0x3f1   :  { %3092 = vrcp.f32 %v517_v59 }
 0x3f2   :  { %3094 = vrcp.f32 %v421_v61 }
 0x3fb   :  { %v3093_v62 = vpop.eup %3092 }
 0x3fc   :  { %v3095_v3 = vpop.eup %3094  ;;  %v521_v6 = vmul.f32 %v3093_v62, %v3455_v29 }
 0x3fd   :  { %v425_v10 = vmul.f32 0.0, %v3095_v3 }
 0x458   :  { %v524_v63 = vpop.permute.xlu0 %523 }
 0x459   :  { %v526_v2 = vmul.f32 %v3093_v62, %v524_v63 }
 0x45b   :  { %528 = vrot.lane.b32.xlu0 %v526_v2, %s3307_s3 }
 0x460   :  { %v428_v4 = vpop.permute.xlu1 %427 }
 0x461   :  { %v430_v5 = vmul.f32 %v3095_v3, %v428_v4 }
 0x463   :  { %432 = vrot.lane.b32.xlu1 %v430_v5, %s3307_s3 }
 0x4cd   :  { %v529_v7 = vpop.permute.xlu0 %528 }
 0x4ce   :  { %v3504_v9 = vadd.f32 %v529_v7, %v521_v6 }
 0x4d0   :  { %3096 = vtanh.f32 %v3504_v9 }
 0x4d5   :  { %v433_v12 = vpop.permute.xlu1 %432 }
 0x4d6   :  { %v3507_v13 = vadd.f32 %v433_v12, %v425_v10 }
 0x4d8   :  { %3098 = vtanh.f32 %v3507_v13 }
 0x4da   :  { %v3097_v14 = vpop.eup %3096 }
 0x4db   :  { %534 = vrot.lane.b32.xlu0 %v3097_v14, %s3306_s4 }
 0x4e2   :  { %v3099_v15 = vpop.eup %3098 }
 0x4e3   :  { %438 = vrot.lane.b32.xlu1 %v3099_v15, %s3306_s4 }
 0x54d   :  { %v535_v16 = vpop.permute.xlu0 %534 }
 0x54e   :  { %v537_v17 = vmul.f32 %v3093_v62, %v535_v16  ;;  %v984_v62 = vld [vmem:[#allocation2 + $0x3] sm:$0x1] }
 0x550   :  { %539 = vrot.lane.b32.xlu0 %v537_v17, %s3307_s3 }
 0x555   :  { %v439_v18 = vpop.permute.xlu1 %438 }
 0x556   :  { %v441_v19 = vmul.f32 %v3095_v3, %v439_v18 }
 0x558   :  { %614 = vrot.lane.b32.xlu1 %v441_v19, %s3307_s3 }
 0x5c2   :  { %v540_v20 = vpop.permute.xlu0 %539 }
 0x5c3   :  { %2666 = vmatmul.mubr.msk.f32.vlgmr.msra.gmra.mrb[4].mxu1 %vm173_vm2, %v540_v20  ;;  %2688 = vmatmul.mubr.msk.f32.vlgmr.msra.gmra.mrb[4].mxu0 %vm173_vm2, %v540_v20 }
 0x5c4   :  { %2923 = vmatpush3.bf16.msra.mxu1 %v3468_v41  ;;  %2676 = vmatprep.mubr.msk.f32.mxu1 %vm3304_vm0, %v3305_v1 }
 0x5c5   :  { %2924 = vmatprep.subr.bf16.mxu1 %v3303_v0  ;;  %2935 = vmatpush3.bf16.msra.mxu0 %v3458_v33 }
 0x5c6   :  { %2936 = vmatprep.subr.bf16.mxu0 %v3303_v0  ;;  %2698 = vmatprep.mubr.msk.f32.mxu0 %vm3304_vm0, %v3305_v1 }
 0x5c8   :  { %2926 = vmatpush3.bf16.msra.mxu1 %v3473_v45 }
 0x5c9   :  { %2945 = vmatprep.subr.bf16.mxu1 %v3303_v0  ;;  %2938 = vmatpush3.bf16.msra.mxu0 %v3461_v35 }
 0x5ca   :  { %v615_v21 = vpop.permute.xlu1 %614  ;;  %2939 = vmatprep.subr.bf16.mxu0 %v3303_v0 }
 0x5cb   :  { %2677 = vmatmul.mubr.msk.f32.vlgmr.msra.gmra.mrb[4].mxu1 %vm173_vm2, %v615_v21 }
 0x5cc   :  { %2947 = vmatpush3.bf16.msra.mxu1 %v3426_v8  ;;  %2720 = vmatprep.mubr.msk.f32.mxu1 %vm3304_vm0, %v3305_v1 }
 0x5cd   :  { %2948 = vmatprep.subr.bf16.mxu1 %v3303_v0 }
 0x5d0   :  { %2950 = vmatpush3.bf16.msra.mxu1 %v3435_v11 }
 0x5d1   :  { %2951 = vmatprep.subr.bf16.mxu1 %v3303_v0 }
 0x696   :  { %v780_v23 = vpop.f32.mrb[4].mxu0 }
 0x697   :  { %v784_v24 = vadd.f32 %v780_v23, %v713_v22  ;;  %v2689_v25 = vpop.f32.mrb[5].mxu0 }
 0x699   :  { %3100 = vtanh.f32 %v784_v24  ;;  %v2448_v31 = vmul.f32 -1.442695, %v784_v24 }
 0x69e   :  { %v684_v26 = vpop.f32.mrb[4].mxu1 }
 0x69f   :  { %v3042_v27 = vadd.f32 %v684_v26, %v3496_v50  ;;  %v2678_v28 = vpop.f32.mrb[5].mxu1 }
 0x6a1   :  { %3102 = vtanh.f32 %v3042_v27  ;;  %v2446_v32 = vmul.f32 -1.442695, %v3042_v27 }
 0x6a2   :  { %3104 = vpow2.f32 %v2448_v31 }
 0x6a3   :  { %v3101_v29 = vpop.eup %3100  ;;  %3106 = vpow2.f32 %v2446_v32 }
 0x6a4   :  { %794 = vrot.lane.b32.xlu0 %v3101_v29, %s3306_s4 }
 0x6ab   :  { %v3103_v30 = vpop.eup %3102 }
 0x6ac   :  { %698 = vrot.lane.b32.xlu1 %v3103_v30, %s3306_s4  ;;  %v3105_v34 = vpop.eup %3104 }
 0x6ad   :  { %v788_v36 = vadd.f32 1.0, %v3105_v34  ;;  %v3107_v37 = vpop.eup %3106 }
 0x6ae   :  { %v692_v38 = vadd.f32 1.0, %v3107_v37 }
 0x6af   :  { %3108 = vrcp.f32 %v788_v36 }
 0x6b0   :  { %3110 = vrcp.f32 %v692_v38 }
 0x6b9   :  { %v3109_v39 = vpop.eup %3108 }
 0x6ba   :  { %v3111_v43 = vpop.eup %3110  ;;  %v792_v47 = vmul.f32 %v3109_v39, %v3504_v9 }
 0x6bb   :  { %v696_v51 = vmul.f32 %v3111_v43, %v3507_v13 }
 0x716   :  { %v795_v40 = vpop.permute.xlu0 %794 }
 0x717   :  { %v797_v42 = vmul.f32 %v3109_v39, %v795_v40 }
 0x719   :  { %799 = vrot.lane.b32.xlu0 %v797_v42, %s3307_s3 }
 0x71e   :  { %v699_v44 = vpop.permute.xlu1 %698 }
 0x71f   :  { %v701_v46 = vmul.f32 %v3111_v43, %v699_v44 }
 0x721   :  { %703 = vrot.lane.b32.xlu1 %v701_v46, %s3307_s3 }
 0x78b   :  { %v800_v48 = vpop.permute.xlu0 %799 }
 0x78c   :  { %v3541_v49 = vadd.f32 %v800_v48, %v792_v47 }
 0x78e   :  { %3112 = vtanh.f32 %v3541_v49 }
 0x793   :  { %v704_v52 = vpop.permute.xlu1 %703 }
 0x794   :  { %v3545_v53 = vadd.f32 %v704_v52, %v696_v51 }
 0x796   :  { %3114 = vtanh.f32 %v3545_v53 }
 0x798   :  { %v3113_v54 = vpop.eup %3112 }
 0x799   :  { %805 = vrot.lane.b32.xlu0 %v3113_v54, %s3306_s4 }
 0x7a0   :  { %v3115_v55 = vpop.eup %3114 }
 0x7a1   :  { %709 = vrot.lane.b32.xlu1 %v3115_v55, %s3306_s4 }
 0x80b   :  { %v806_v56 = vpop.permute.xlu0 %805 }
 0x80c   :  { %v808_v57 = vmul.f32 %v3109_v39, %v806_v56  ;;  %v1255_v39 = vld [vmem:[#allocation2 + $0x4] sm:$0x1] }
 0x80e   :  { %810 = vrot.lane.b32.xlu0 %v808_v57, %s3307_s3 }
 0x813   :  { %v710_v58 = vpop.permute.xlu1 %709 }
 0x814   :  { %v712_v59 = vmul.f32 %v3111_v43, %v710_v58 }
 0x816   :  { %885 = vrot.lane.b32.xlu1 %v712_v59, %s3307_s3 }
 0x880   :  { %v811_v60 = vpop.permute.xlu0 %810 }
 0x881   :  { %2699 = vmatmul.mubr.msk.f32.vlgmr.msra.gmra.mrb[6].mxu0 %vm173_vm2, %v811_v60  ;;  %2721 = vmatmul.mubr.msk.f32.vlgmr.msra.gmra.mrb[6].mxu1 %vm173_vm2, %v811_v60 }
 0x882   :  { %2941 = vmatpush3.bf16.msra.mxu0 %v3468_v41  ;;  %2709 = vmatprep.mubr.msk.f32.mxu0 %vm3304_vm0, %v3305_v1 }
 0x883   :  { %2942 = vmatprep.subr.bf16.mxu0 %v3303_v0  ;;  %2953 = vmatpush3.bf16.msra.mxu1 %v3458_v33 }
 0x884   :  { %2954 = vmatprep.subr.bf16.mxu1 %v3303_v0  ;;  %2731 = vmatprep.mubr.msk.f32.mxu1 %vm3304_vm0, %v3305_v1 }
 0x886   :  { %2944 = vmatpush3.bf16.msra.mxu0 %v3473_v45 }
 0x887   :  { %2963 = vmatprep.subr.bf16.mxu0 %v3303_v0  ;;  %2956 = vmatpush3.bf16.msra.mxu1 %v3461_v35 }
 0x888   :  { %v886_v61 = vpop.permute.xlu1 %885  ;;  %2957 = vmatprep.subr.bf16.mxu1 %v3303_v0 }
 0x889   :  { %2710 = vmatmul.mubr.msk.f32.vlgmr.msra.gmra.mrb[6].mxu0 %vm173_vm2, %v886_v61 }
 0x88a   :  { %2965 = vmatpush3.bf16.msra.mxu0 %v3426_v8  ;;  %2753 = vmatprep.mubr.msk.f32.mxu0 %vm3304_vm0, %v3305_v1 }
 0x88b   :  { %2966 = vmatprep.subr.bf16.mxu0 %v3303_v0 }
 0x88e   :  { %2968 = vmatpush3.bf16.msra.mxu0 %v3435_v11 }
 0x88f   :  { %2969 = vmatprep.subr.bf16.mxu0 %v3303_v0 }
 0x954   :  { %v1051_v63 = vpop.f32.mrb[6].mxu1 }
 0x955   :  { %v1055_v2 = vadd.f32 %v1051_v63, %v984_v62  ;;  %v2722_v3 = vpop.f32.mrb[7].mxu1 }
 0x957   :  { %3116 = vtanh.f32 %v1055_v2  ;;  %v2453_v10 = vmul.f32 -1.442695, %v1055_v2 }
 0x95c   :  { %v955_v4 = vpop.f32.mrb[6].mxu0 }
 0x95d   :  { %v3043_v5 = vadd.f32 %v955_v4, %v3496_v50  ;;  %v2711_v6 = vpop.f32.mrb[7].mxu0 }
 0x95f   :  { %3118 = vtanh.f32 %v3043_v5  ;;  %v2451_v12 = vmul.f32 -1.442695, %v3043_v5 }
 0x960   :  { %3120 = vpow2.f32 %v2453_v10 }
 0x961   :  { %v3117_v7 = vpop.eup %3116  ;;  %3122 = vpow2.f32 %v2451_v12 }
 0x962   :  { %1065 = vrot.lane.b32.xlu0 %v3117_v7, %s3306_s4 }
 0x969   :  { %v3119_v9 = vpop.eup %3118 }
 0x96a   :  { %969 = vrot.lane.b32.xlu1 %v3119_v9, %s3306_s4  ;;  %v3121_v13 = vpop.eup %3120 }
 0x96b   :  { %v1059_v14 = vadd.f32 1.0, %v3121_v13  ;;  %v3123_v15 = vpop.eup %3122 }
 0x96c   :  { %v963_v16 = vadd.f32 1.0, %v3123_v15 }
 0x96d   :  { %3124 = vrcp.f32 %v1059_v14 }
 0x96e   :  { %3126 = vrcp.f32 %v963_v16 }
 0x977   :  { %v3125_v17 = vpop.eup %3124 }
 0x978   :  { %v3127_v20 = vpop.eup %3126  ;;  %v1063_v23 = vmul.f32 %v3125_v17, %v3541_v49 }
 0x979   :  { %v967_v26 = vmul.f32 %v3127_v20, %v3545_v53 }
 0x9d4   :  { %v1066_v18 = vpop.permute.xlu0 %1065 }
 0x9d5   :  { %v1068_v19 = vmul.f32 %v3125_v17, %v1066_v18 }
 0x9d7   :  { %1070 = vrot.lane.b32.xlu0 %v1068_v19, %s3307_s3 }
 0x9dc   :  { %v970_v21 = vpop.permute.xlu1 %969 }
 0x9dd   :  { %v972_v22 = vmul.f32 %v3127_v20, %v970_v21 }
 0x9df   :  { %974 = vrot.lane.b32.xlu1 %v972_v22, %s3307_s3 }
 0xa49   :  { %v1071_v24 = vpop.permute.xlu0 %1070 }
 0xa4a   :  { %v3579_v25 = vadd.f32 %v1071_v24, %v1063_v23 }
 0xa4c   :  { %3128 = vtanh.f32 %v3579_v25 }
 0xa51   :  { %v975_v27 = vpop.permute.xlu1 %974 }
 0xa52   :  { %v3583_v28 = vadd.f32 %v975_v27, %v967_v26 }
 0xa54   :  { %3130 = vtanh.f32 %v3583_v28 }
 0xa56   :  { %v3129_v29 = vpop.eup %3128 }
 0xa57   :  { %1076 = vrot.lane.b32.xlu0 %v3129_v29, %s3306_s4 }
 0xa5e   :  { %v3131_v30 = vpop.eup %3130 }
 0xa5f   :  { %980 = vrot.lane.b32.xlu1 %v3131_v30, %s3306_s4 }
 0xac9   :  { %v1077_v31 = vpop.permute.xlu0 %1076 }
 0xaca   :  { %v1079_v32 = vmul.f32 %v3125_v17, %v1077_v31  ;;  %v1526_v17 = vld [vmem:[#allocation2 + $0x5] sm:$0x1] }
 0xacc   :  { %1081 = vrot.lane.b32.xlu0 %v1079_v32, %s3307_s3 }
 0xad1   :  { %v981_v34 = vpop.permute.xlu1 %980 }
 0xad2   :  { %v983_v36 = vmul.f32 %v3127_v20, %v981_v34 }
 0xad4   :  { %1156 = vrot.lane.b32.xlu1 %v983_v36, %s3307_s3 }
 0xb3e   :  { %v1082_v37 = vpop.permute.xlu0 %1081 }
 0xb3f   :  { %2732 = vmatmul.mubr.msk.f32.vlgmr.msra.gmra.mrb[8].mxu1 %vm173_vm2, %v1082_v37  ;;  %2754 = vmatmul.mubr.msk.f32.vlgmr.msra.gmra.mrb[8].mxu0 %vm173_vm2, %v1082_v37 }
 0xb40   :  { %2959 = vmatpush3.bf16.msra.mxu1 %v3468_v41  ;;  %2742 = vmatprep.mubr.msk.f32.mxu1 %vm3304_vm0, %v3305_v1 }
 0xb41   :  { %2960 = vmatprep.subr.bf16.mxu1 %v3303_v0  ;;  %2971 = vmatpush3.bf16.msra.mxu0 %v3458_v33 }
 0xb42   :  { %2972 = vmatprep.subr.bf16.mxu0 %v3303_v0  ;;  %2764 = vmatprep.mubr.msk.f32.mxu0 %vm3304_vm0, %v3305_v1 }
 0xb44   :  { %2962 = vmatpush3.bf16.msra.mxu1 %v3473_v45 }
 0xb45   :  { %2981 = vmatprep.subr.bf16.mxu1 %v3303_v0  ;;  %2974 = vmatpush3.bf16.msra.mxu0 %v3461_v35 }
 0xb46   :  { %v1157_v38 = vpop.permute.xlu1 %1156  ;;  %2975 = vmatprep.subr.bf16.mxu0 %v3303_v0 }
 0xb47   :  { %2743 = vmatmul.mubr.msk.f32.vlgmr.msra.gmra.mrb[8].mxu1 %vm173_vm2, %v1157_v38 }
 0xb48   :  { %2983 = vmatpush3.bf16.msra.mxu1 %v3426_v8  ;;  %2786 = vmatprep.mubr.msk.f32.mxu1 %vm3304_vm0, %v3305_v1 }
 0xb49   :  { %2984 = vmatprep.subr.bf16.mxu1 %v3303_v0 }
 0xb4c   :  { %2986 = vmatpush3.bf16.msra.mxu1 %v3435_v11 }
 0xb4d   :  { %2987 = vmatprep.subr.bf16.mxu1 %v3303_v0 }
 0xc12   :  { %v1322_v40 = vpop.f32.mrb[8].mxu0 }
 0xc13   :  { %v1326_v42 = vadd.f32 %v1322_v40, %v1255_v39  ;;  %v2755_v43 = vpop.f32.mrb[9].mxu0 }
 0xc15   :  { %3132 = vtanh.f32 %v1326_v42  ;;  %v2458_v51 = vmul.f32 -1.442695, %v1326_v42 }
 0xc1a   :  { %v1226_v44 = vpop.f32.mrb[8].mxu1 }
 0xc1b   :  { %v3044_v46 = vadd.f32 %v1226_v44, %v3496_v50  ;;  %v2744_v47 = vpop.f32.mrb[9].mxu1 }
 0xc1d   :  { %3134 = vtanh.f32 %v3044_v46  ;;  %v2456_v52 = vmul.f32 -1.442695, %v3044_v46 }
 0xc1e   :  { %3136 = vpow2.f32 %v2458_v51 }
 0xc1f   :  { %v3133_v48 = vpop.eup %3132  ;;  %3138 = vpow2.f32 %v2456_v52 }
 0xc20   :  { %1336 = vrot.lane.b32.xlu0 %v3133_v48, %s3306_s4 }
 0xc27   :  { %v3135_v49 = vpop.eup %3134 }
 0xc28   :  { %1240 = vrot.lane.b32.xlu1 %v3135_v49, %s3306_s4  ;;  %v3137_v53 = vpop.eup %3136 }
 0xc29   :  { %v1330_v54 = vadd.f32 1.0, %v3137_v53  ;;  %v3139_v55 = vpop.eup %3138 }
 0xc2a   :  { %v1234_v56 = vadd.f32 1.0, %v3139_v55 }
 0xc2b   :  { %3140 = vrcp.f32 %v1330_v54 }
 0xc2c   :  { %3142 = vrcp.f32 %v1234_v56 }
 0xc35   :  { %v3141_v57 = vpop.eup %3140 }
 0xc36   :  { %v3143_v60 = vpop.eup %3142  ;;  %v1334_v63 = vmul.f32 %v3141_v57, %v3579_v25 }
 0xc37   :  { %v1238_v4 = vmul.f32 %v3143_v60, %v3583_v28 }
 0xc92   :  { %v1337_v58 = vpop.permute.xlu0 %1336 }
 0xc93   :  { %v1339_v59 = vmul.f32 %v3141_v57, %v1337_v58 }
 0xc95   :  { %1341 = vrot.lane.b32.xlu0 %v1339_v59, %s3307_s3 }
 0xc9a   :  { %v1241_v61 = vpop.permute.xlu1 %1240 }
 0xc9b   :  { %v1243_v62 = vmul.f32 %v3143_v60, %v1241_v61 }
 0xc9d   :  { %1245 = vrot.lane.b32.xlu1 %v1243_v62, %s3307_s3 }
 0xd07   :  { %v1342_v2 = vpop.permute.xlu0 %1341 }
 0xd08   :  { %v3617_v3 = vadd.f32 %v1342_v2, %v1334_v63 }
 0xd0a   :  { %3144 = vtanh.f32 %v3617_v3 }
 0xd0f   :  { %v1246_v5 = vpop.permute.xlu1 %1245 }
 0xd10   :  { %v3621_v6 = vadd.f32 %v1246_v5, %v1238_v4 }
 0xd12   :  { %3146 = vtanh.f32 %v3621_v6 }
 0xd14   :  { %v3145_v7 = vpop.eup %3144 }
 0xd15   :  { %1347 = vrot.lane.b32.xlu0 %v3145_v7, %s3306_s4 }
 0xd1c   :  { %v3147_v9 = vpop.eup %3146 }
 0xd1d   :  { %1251 = vrot.lane.b32.xlu1 %v3147_v9, %s3306_s4 }
 0xd87   :  { %v1348_v10 = vpop.permute.xlu0 %1347 }
 0xd88   :  { %v1350_v12 = vmul.f32 %v3141_v57, %v1348_v10  ;;  %v1797_v57 = vld [vmem:[#allocation2 + $0x6] sm:$0x1] }
 0xd8a   :  { %1352 = vrot.lane.b32.xlu0 %v1350_v12, %s3307_s3 }
 0xd8f   :  { %v1252_v13 = vpop.permute.xlu1 %1251 }
 0xd90   :  { %v1254_v14 = vmul.f32 %v3143_v60, %v1252_v13 }
 0xd92   :  { %1427 = vrot.lane.b32.xlu1 %v1254_v14, %s3307_s3 }
 0xdfc   :  { %v1353_v15 = vpop.permute.xlu0 %1352 }
 0xdfd   :  { %2765 = vmatmul.mubr.msk.f32.vlgmr.msra.gmra.mrb[10].mxu0 %vm173_vm2, %v1353_v15  ;;  %2787 = vmatmul.mubr.msk.f32.vlgmr.msra.gmra.mrb[10].mxu1 %vm173_vm2, %v1353_v15 }
 0xdfe   :  { %2977 = vmatpush3.bf16.msra.mxu0 %v3468_v41  ;;  %2775 = vmatprep.mubr.msk.f32.mxu0 %vm3304_vm0, %v3305_v1 }
 0xdff   :  { %2978 = vmatprep.subr.bf16.mxu0 %v3303_v0  ;;  %2989 = vmatpush3.bf16.msra.mxu1 %v3458_v33 }
 0xe00   :  { %2990 = vmatprep.subr.bf16.mxu1 %v3303_v0  ;;  %2797 = vmatprep.mubr.msk.f32.mxu1 %vm3304_vm0, %v3305_v1 }
 0xe02   :  { %2980 = vmatpush3.bf16.msra.mxu0 %v3473_v45 }
 0xe03   :  { %2999 = vmatprep.subr.bf16.mxu0 %v3303_v0  ;;  %2992 = vmatpush3.bf16.msra.mxu1 %v3461_v35 }
 0xe04   :  { %v1428_v16 = vpop.permute.xlu1 %1427  ;;  %2993 = vmatprep.subr.bf16.mxu1 %v3303_v0 }
 0xe05   :  { %2776 = vmatmul.mubr.msk.f32.vlgmr.msra.gmra.mrb[10].mxu0 %vm173_vm2, %v1428_v16 }
 0xe06   :  { %3001 = vmatpush3.bf16.msra.mxu0 %v3426_v8  ;;  %2819 = vmatprep.mubr.msk.f32.mxu0 %vm3304_vm0, %v3305_v1 }
 0xe07   :  { %3002 = vmatprep.subr.bf16.mxu0 %v3303_v0 }
 0xe0a   :  { %3004 = vmatpush3.bf16.msra.mxu0 %v3435_v11 }
 0xe0b   :  { %3005 = vmatprep.subr.bf16.mxu0 %v3303_v0 }
 0xed0   :  { %v1593_v18 = vpop.f32.mrb[10].mxu1 }
 0xed1   :  { %v1597_v19 = vadd.f32 %v1593_v18, %v1526_v17  ;;  %v2788_v20 = vpop.f32.mrb[11].mxu1 }
 0xed3   :  { %3148 = vtanh.f32 %v1597_v19  ;;  %v2463_v26 = vmul.f32 -1.442695, %v1597_v19 }
 0xed8   :  { %v1497_v21 = vpop.f32.mrb[10].mxu0 }
 0xed9   :  { %v3045_v22 = vadd.f32 %v1497_v21, %v3496_v50  ;;  %v2777_v23 = vpop.f32.mrb[11].mxu0 }
 0xedb   :  { %3150 = vtanh.f32 %v3045_v22  ;;  %v2461_v27 = vmul.f32 -1.442695, %v3045_v22 }
 0xedc   :  { %3152 = vpow2.f32 %v2463_v26 }
 0xedd   :  { %v3149_v24 = vpop.eup %3148  ;;  %3154 = vpow2.f32 %v2461_v27 }
 0xede   :  { %1607 = vrot.lane.b32.xlu0 %v3149_v24, %s3306_s4 }
 0xee5   :  { %v3151_v25 = vpop.eup %3150 }
 0xee6   :  { %1511 = vrot.lane.b32.xlu1 %v3151_v25, %s3306_s4  ;;  %v3153_v28 = vpop.eup %3152 }
 0xee7   :  { %v1601_v29 = vadd.f32 1.0, %v3153_v28  ;;  %v3155_v30 = vpop.eup %3154 }
 0xee8   :  { %v1505_v31 = vadd.f32 1.0, %v3155_v30 }
 0xee9   :  { %3156 = vrcp.f32 %v1601_v29 }
 0xeea   :  { %3158 = vrcp.f32 %v1505_v31 }
 0xef3   :  { %v3157_v32 = vpop.eup %3156 }
 0xef4   :  { %v3159_v37 = vpop.eup %3158  ;;  %v1605_v40 = vmul.f32 %v3157_v32, %v3617_v3 }
 0xef5   :  { %v1509_v44 = vmul.f32 %v3159_v37, %v3621_v6 }
 0xf50   :  { %v1608_v34 = vpop.permute.xlu0 %1607 }
 0xf51   :  { %v1610_v36 = vmul.f32 %v3157_v32, %v1608_v34 }
 0xf53   :  { %1612 = vrot.lane.b32.xlu0 %v1610_v36, %s3307_s3 }
 0xf58   :  { %v1512_v38 = vpop.permute.xlu1 %1511 }
 0xf59   :  { %v1514_v39 = vmul.f32 %v3159_v37, %v1512_v38 }
 0xf5b   :  { %1516 = vrot.lane.b32.xlu1 %v1514_v39, %s3307_s3 }
 0xfc5   :  { %v1613_v42 = vpop.permute.xlu0 %1612 }
 0xfc6   :  { %v3655_v43 = vadd.f32 %v1613_v42, %v1605_v40 }
 0xfc8   :  { %3160 = vtanh.f32 %v3655_v43 }
 0xfcd   :  { %v1517_v46 = vpop.permute.xlu1 %1516 }
 0xfce   :  { %v3659_v47 = vadd.f32 %v1517_v46, %v1509_v44 }
 0xfd0   :  { %3162 = vtanh.f32 %v3659_v47 }
 0xfd2   :  { %v3161_v48 = vpop.eup %3160 }
 0xfd3   :  { %1618 = vrot.lane.b32.xlu0 %v3161_v48, %s3306_s4 }
 0xfda   :  { %v3163_v49 = vpop.eup %3162 }
 0xfdb   :  { %1522 = vrot.lane.b32.xlu1 %v3163_v49, %s3306_s4 }
0x1045   :  { %v1619_v51 = vpop.permute.xlu0 %1618 }
0x1046   :  { %v1621_v52 = vmul.f32 %v3157_v32, %v1619_v51 }
0x1048   :  { %1623 = vrot.lane.b32.xlu0 %v1621_v52, %s3307_s3 }
0x104d   :  { %v1523_v53 = vpop.permute.xlu1 %1522 }
0x104e   :  { %v1525_v54 = vmul.f32 %v3159_v37, %v1523_v53 }
0x1050   :  { %1698 = vrot.lane.b32.xlu1 %v1525_v54, %s3307_s3 }
0x10ba   :  { %v1624_v55 = vpop.permute.xlu0 %1623 }
0x10bb   :  { %2798 = vmatmul.mubr.msk.f32.vlgmr.msra.gmra.mrb[12].mxu1 %vm173_vm2, %v1624_v55  ;;  %2820 = vmatmul.mubr.msk.f32.vlgmr.msra.gmra.mrb[12].mxu0 %vm173_vm2, %v1624_v55 }
0x10bc   :  { %2995 = vmatpush3.bf16.msra.mxu1 %v3468_v41  ;;  %2808 = vmatprep.mubr.msk.f32.mxu1 %vm3304_vm0, %v3305_v1 }
0x10bd   :  { %2996 = vmatprep.subr.bf16.mxu1 %v3303_v0  ;;  %3007 = vmatpush3.bf16.msra.mxu0 %v3458_v33 }
0x10be   :  { %3008 = vmatprep.subr.bf16.mxu0 %v3303_v0  ;;  %2830 = vmatprep.mubr.msk.f32.mxu0 %vm3304_vm0, %v3305_v1 }
0x10c0   :  { %2998 = vmatpush3.bf16.msra.mxu1 %v3473_v45 }
0x10c1   :  { %3017 = vmatprep.subr.bf16.mxu1 %v3303_v0  ;;  %3010 = vmatpush3.bf16.msra.mxu0 %v3461_v35 }
0x10c2   :  { %v1699_v56 = vpop.permute.xlu1 %1698  ;;  %3011 = vmatprep.subr.bf16.mxu0 %v3303_v0 }
0x10c3   :  { %2809 = vmatmul.mubr.msk.f32.vlgmr.msra.gmra.mrb[12].mxu1 %vm173_vm2, %v1699_v56 }
0x10c4   :  { %3019 = vmatpush3.bf16.msra.mxu1 %v3426_v8  ;;  %2852 = vmatprep.mubr.msk.f32.mxu1 %vm3304_vm0, %v3305_v1 }
0x10c5   :  { %3020 = vmatprep.subr.bf16.mxu1 %v3303_v0 }
0x10c8   :  { %3022 = vmatpush3.bf16.msra.mxu1 %v3435_v11 }
0x10c9   :  { %3023 = vmatprep.subr.bf16.mxu1 %v3303_v0 }
0x118e   :  { %v1864_v58 = vpop.f32.mrb[12].mxu0 }
0x118f   :  { %v1868_v59 = vadd.f32 %v1864_v58, %v1797_v57  ;;  %v2821_v60 = vpop.f32.mrb[13].mxu0 }
0x1191   :  { %3164 = vtanh.f32 %v1868_v59  ;;  %v2468_v3 = vmul.f32 -1.442695, %v1868_v59 }
0x1196   :  { %v1768_v61 = vpop.f32.mrb[12].mxu1 }
0x1197   :  { %v3046_v62 = vadd.f32 %v1768_v61, %v3496_v50  ;;  %v2810_v63 = vpop.f32.mrb[13].mxu1 }
0x1199   :  { %3166 = vtanh.f32 %v3046_v62  ;;  %v2466_v11 = vmul.f32 -1.442695, %v3046_v62 }
0x119a   :  { %3168 = vpow2.f32 %v2468_v3 }
0x119b   :  { %v3165_v8 = vpop.eup %3164  ;;  %3170 = vpow2.f32 %v2466_v11 }
0x119c   :  { %1878 = vrot.lane.b32.xlu0 %v3165_v8, %s3306_s4 }
0x11a3   :  { %v3167_v2 = vpop.eup %3166 }
0x11a4   :  { %1782 = vrot.lane.b32.xlu1 %v3167_v2, %s3306_s4  ;;  %v3169_v4 = vpop.eup %3168 }
0x11a5   :  { %v1872_v5 = vadd.f32 1.0, %v3169_v4  ;;  %v3171_v6 = vpop.eup %3170 }
0x11a6   :  { %v1776_v7 = vadd.f32 1.0, %v3171_v6 }
0x11a7   :  { %3172 = vrcp.f32 %v1872_v5 }
0x11a8   :  { %3174 = vrcp.f32 %v1776_v7 }
0x11b1   :  { %v3173_v9 = vpop.eup %3172 }
0x11b2   :  { %v3175_v13 = vpop.eup %3174  ;;  %v1876_v16 = vmul.f32 %v3173_v9, %v3655_v43 }
0x11b3   :  { %v1780_v19 = vmul.f32 %v3175_v13, %v3659_v47 }
0x120e   :  { %v1879_v10 = vpop.permute.xlu0 %1878 }
0x120f   :  { %v1881_v12 = vmul.f32 %v3173_v9, %v1879_v10 }
0x1211   :  { %1883 = vrot.lane.b32.xlu0 %v1881_v12, %s3307_s3 }
0x1216   :  { %v1783_v14 = vpop.permute.xlu1 %1782 }
0x1217   :  { %v1785_v15 = vmul.f32 %v3175_v13, %v1783_v14 }
0x1219   :  { %1787 = vrot.lane.b32.xlu1 %v1785_v15, %s3307_s3 }
0x1283   :  { %v1884_v17 = vpop.permute.xlu0 %1883 }
0x1284   :  { %v3693_v18 = vadd.f32 %v1884_v17, %v1876_v16  ;;  %v2340_v16 = vld [vmem:[%s3780_s7 + $0x8] sm:$0xff]  ;;  %v2341_v17 = vld [vmem:[%s3780_s7 + $0x10] sm:$0xff] }
0x1286   :  { %3176 = vtanh.f32 %v3693_v18 }
0x128b   :  { %v1788_v20 = vpop.permute.xlu1 %1787 }
0x128c   :  { %v3697_v21 = vadd.f32 %v1788_v20, %v1780_v19  ;;  %v2342_v19 = vld [vmem:[%s3780_s7 + $0x18] sm:$0xff] }
0x128d   :  { %v3039_v20 = vpack.c.bf16 %v2342_v19, %v2341_v17 }
0x128e   :  { %3178 = vtanh.f32 %v3697_v21 }
0x1290   :  { %v3177_v22 = vpop.eup %3176 }
0x1291   :  { %1889 = vrot.lane.b32.xlu0 %v3177_v22, %s3306_s4 }
0x1298   :  { %v3179_v23 = vpop.eup %3178 }
0x1299   :  { %1793 = vrot.lane.b32.xlu1 %v3179_v23, %s3306_s4 }
0x1303   :  { %v1890_v24 = vpop.permute.xlu0 %1889 }
0x1304   :  { %v1892_v25 = vmul.f32 %v3173_v9, %v1890_v24 }
0x1306   :  { %1894 = vrot.lane.b32.xlu0 %v1892_v25, %s3307_s3  ;;  %v2343_v25 = vld [vmem:[%s3781_s8] sm:$0x1] }
0x130b   :  { %v1794_v26 = vpop.permute.xlu1 %1793 }
0x130c   :  { %v1796_v27 = vmul.f32 %v3175_v13, %v1794_v26 }
0x130e   :  { %1969 = vrot.lane.b32.xlu1 %v1796_v27, %s3307_s3 }
0x1378   :  { %v1895_v28 = vpop.permute.xlu0 %1894 }
0x1379   :  { %2831 = vmatmul.mubr.msk.f32.vlgmr.msra.gmra.mrb[14].mxu0 %vm173_vm2, %v1895_v28  ;;  %2853 = vmatmul.mubr.msk.f32.vlgmr.msra.gmra.mrb[14].mxu1 %vm173_vm2, %v1895_v28 }
0x137a   :  { %3013 = vmatpush3.bf16.msra.mxu0 %v3468_v41  ;;  %2841 = vmatprep.mubr.msk.f32.mxu0 %vm3304_vm0, %v3305_v1 }
0x137b   :  { %3014 = vmatprep.subr.bf16.mxu0 %v3303_v0  ;;  %3025 = vmatpush3.bf16.msra.mxu1 %v3458_v33  ;;  %v2068_v33 = vld [vmem:[#allocation2 + $0x7] sm:$0x1] }
0x137c   :  { %3026 = vmatprep.subr.bf16.mxu1 %v3303_v0  ;;  %2863 = vmatprep.mubr.msk.f32.mxu1 %vm3304_vm0, %v3305_v1 }
0x137e   :  { %3016 = vmatpush3.bf16.msra.mxu0 %v3473_v45 }
0x137f   :  { %3028 = vmatpush3.bf16.msra.mxu1 %v3461_v35  ;;  %3035 = vmatprep.subr.bf16.mxu0 %v3303_v0 }
0x1380   :  { %v1970_v29 = vpop.permute.xlu1 %1969  ;;  %3029 = vmatprep.subr.bf16.mxu1 %v3303_v0 }
0x1381   :  { %2842 = vmatmul.mubr.msk.f32.vlgmr.msra.gmra.mrb[14].mxu0 %vm173_vm2, %v1970_v29 }
0x1382   :  { %2885 = vmatprep.mubr.msk.f32.mxu0 %vm3304_vm0, %v3305_v1 }
0x144c   :  { %v2135_v30 = vpop.f32.mrb[14].mxu1 }
0x144d   :  { %v2139_v31 = vadd.f32 %v2135_v30, %v2068_v33  ;;  %v2854_v32 = vpop.f32.mrb[15].mxu1 }
0x144f   :  { %3180 = vtanh.f32 %v2139_v31  ;;  %v2473_v39 = vmul.f32 -1.442695, %v2139_v31 }
0x1454   :  { %v2039_v34 = vpop.f32.mrb[14].mxu0 }
0x1455   :  { %v3047_v36 = vadd.f32 %v2039_v34, %v3496_v50  ;;  %v2843_v37 = vpop.f32.mrb[15].mxu0 }
0x1457   :  { %3182 = vtanh.f32 %v3047_v36  ;;  %v2471_v40 = vmul.f32 -1.442695, %v3047_v36 }
0x1458   :  { %3184 = vpow2.f32 %v2473_v39 }
0x1459   :  { %v3181_v35 = vpop.eup %3180  ;;  %3186 = vpow2.f32 %v2471_v40 }
0x145a   :  { %2149 = vrot.lane.b32.xlu0 %v3181_v35, %s3306_s4 }
0x1461   :  { %v3183_v38 = vpop.eup %3182 }
0x1462   :  { %2053 = vrot.lane.b32.xlu1 %v3183_v38, %s3306_s4  ;;  %v3185_v42 = vpop.eup %3184 }
0x1463   :  { %v2143_v43 = vadd.f32 1.0, %v3185_v42  ;;  %v3187_v44 = vpop.eup %3186 }
0x1464   :  { %v2047_v46 = vadd.f32 1.0, %v3187_v44 }
0x1465   :  { %3188 = vrcp.f32 %v2143_v43 }
0x1466   :  { %3190 = vrcp.f32 %v2047_v46 }
0x146f   :  { %v3189_v47 = vpop.eup %3188 }
0x1470   :  { %v3191_v51 = vpop.eup %3190  ;;  %v2147_v54 = vmul.f32 %v3189_v47, %v3693_v18 }
0x1471   :  { %v2051_v57 = vmul.f32 %v3191_v51, %v3697_v21 }
0x14cc   :  { %v2150_v48 = vpop.permute.xlu0 %2149 }
0x14cd   :  { %v2152_v49 = vmul.f32 %v3189_v47, %v2150_v48 }
0x14cf   :  { %2154 = vrot.lane.b32.xlu0 %v2152_v49, %s3307_s3 }
0x14d4   :  { %v2054_v52 = vpop.permute.xlu1 %2053 }
0x14d5   :  { %v2056_v53 = vmul.f32 %v3191_v51, %v2054_v52 }
0x14d7   :  { %2058 = vrot.lane.b32.xlu1 %v2056_v53, %s3307_s3 }
0x1541   :  { %v2155_v55 = vpop.permute.xlu0 %2154 }
0x1542   :  { %v2157_v56 = vadd.f32 %v2155_v55, %v2147_v54 }
0x1544   :  { %3192 = vtanh.f32 %v2157_v56 }
0x1549   :  { %v2059_v58 = vpop.permute.xlu1 %2058 }
0x154a   :  { %v2061_v59 = vadd.f32 %v2059_v58, %v2051_v57 }
0x154c   :  { %3194 = vtanh.f32 %v2061_v59 }
0x154e   :  { %v3193_v60 = vpop.eup %3192 }
0x154f   :  { %2160 = vrot.lane.b32.xlu0 %v3193_v60, %s3306_s4 }
0x1556   :  { %v3195_v61 = vpop.eup %3194 }
0x1557   :  { %2064 = vrot.lane.b32.xlu1 %v3195_v61, %s3306_s4 }
0x15c1   :  { %v2161_v62 = vpop.permute.xlu0 %2160 }
0x15c2   :  { %v2163_v63 = vmul.f32 %v3189_v47, %v2161_v62 }
0x15c4   :  { %2165 = vrot.lane.b32.xlu0 %v2163_v63, %s3307_s3 }
0x15c9   :  { %v2065_v8 = vpop.permute.xlu1 %2064 }
0x15ca   :  { %v2067_v2 = vmul.f32 %v3191_v51, %v2065_v8 }
0x15cc   :  { %2240 = vrot.lane.b32.xlu1 %v2067_v2, %s3307_s3 }
0x1636   :  { %v2166_v3 = vpop.permute.xlu0 %2165 }
0x1637   :  { %2864 = vmatmul.mubr.msk.f32.vlgmr.msra.gmra.mrb[16].mxu1 %vm173_vm2, %v2166_v3 }
0x1638   :  { %3031 = vmatpush3.bf16.msra.mxu1 %v3468_v41  ;;  %2874 = vmatprep.mubr.msk.f32.mxu1 %vm3304_vm0, %v3305_v1 }
0x1639   :  { %3032 = vmatprep.subr.bf16.mxu1 %v3303_v0 }
0x163c   :  { %3034 = vmatpush3.bf16.msra.mxu1 %v3473_v45 }
0x163e   :  { %v2241_v11 = vpop.permute.xlu1 %2240 }
0x163f   :  { %2875 = vmatmul.mubr.msk.f32.vlgmr.msra.gmra.mrb[16].mxu1 %vm173_vm2, %v2241_v11 }
0x1712   :  { %v2310_v4 = vpop.f32.mrb[16].mxu1 }
0x1713   :  { %v3048_v5 = vadd.f32 %v2310_v4, %v3496_v50  ;;  %v2876_v6 = vpop.f32.mrb[17].mxu1  ;;  %v2339_v50 = vld [vmem:[%s3780_s7] sm:$0xff]  ;;  %s3308_s7 = smov [#allocation9]  }
0x1714   :  { %v3036_v18 = vpack.c.bf16 %v2340_v16, %v2339_v50  ;;  %s2427_s1 = sshll.u32 %s3308_s7, 4  ;;  %s2428_s1 = int_to_ptr.vmem [resolvable:$true] %s2427_s1 }
0x1715   :  { %3196 = vtanh.f32 %v3048_v5  ;;  %v2476_v9 = vmul.f32 -1.442695, %v3048_v5  ;;  %s3270_s12 = scalar_lea.vmem %s2428_s1, 16  ;;  %s3274_s5 = scalar_lea.vmem %s2428_s1, 32 }
0x1716   :  { %3037 = vmatpush3.bf16.msra.mxu0 %v3036_v18  ;;  %p3271_p10 = scmp.ne.s32.totalorder %s2428_s1, %s3270_s12  ;;  %p3275_p11 = scmp.lt.s32.totalorder %s2428_s1, %s2428_s1 }
0x1717   :  { %3198 = vpow2.f32 %v2476_v9  ;;  %3038 = vmatprep.subr.bf16.mxu0 %v3303_v0  ;;  %p3276_p12 = scmp.lt.s32.totalorder %s3274_s5, %s3270_s12 }
0x1719   :  { %p3277_p13 = por %p3276_p12, %p3275_p11 }
0x171a   :  { %3040 = vmatpush3.bf16.msra.mxu0 %v3039_v20 }
0x171b   :  { %p3278_p0 = pnand %p3277_p13, %p3271_p10 }
0x171f   :  { %v3197_v7 = vpop.eup %3196 }
0x1720   :  { %2324 = vrot.lane.b32.xlu0 %v3197_v7, %s3306_s4 }
0x1721   :  { %v3199_v41 = vpop.eup %3198 }
0x1722   :  { %v2318_v10 = vadd.f32 1.0, %v3199_v41 }
0x1724   :  { %3200 = vrcp.f32 %v2318_v10 }
0x172e   :  { %v3201_v1 = vpop.eup %3200 }
0x172f   :  { %v2322_v45 = vmul.f32 %v3201_v1, %v2061_v59 }
0x1792   :  { %v2325_v12 = vpop.permute.xlu0 %2324 }
0x1793   :  { %v2327_v13 = vmul.f32 %v3201_v1, %v2325_v12 }
0x1795   :  { %2329 = vrot.lane.b32.xlu1 %v2327_v13, %s3307_s3 }
0x1807   :  { %v2330_v14 = vpop.permute.xlu1 %2329 }
0x1808   :  { %v2332_v15 = vadd.f32 %v2330_v14, %v2322_v45 }
0x180a   :  { %3202 = vtanh.f32 %v2332_v15 }
0x1814   :  { %v3203_v21 = vpop.eup %3202 }
0x1815   :  { %2335 = vrot.lane.b32.xlu0 %v3203_v21, %s3306_s4 }
0x1887   :  { %v2336_v22 = vpop.permute.xlu0 %2335 }
0x1888   :  { %v2338_v23 = vmul.f32 %v3201_v1, %v2336_v22 }
0x188a   :  { %2345 = vrot.lane.b32.xlu1 %v2338_v23, %s3307_s3 }
0x18fc   :  { %v2346_v24 = vpop.permute.xlu1 %2345 }
0x18fd   :  { %2886 = vmatmul.mubr.msk.f32.vlgmr.msra.gmra.mrb[16].mxu0 %vm173_vm2, %v2346_v24 }
0x19d0   :  { %v2415_v26 = vpop.f32.mrb[16].mxu0 }
0x19d1   :  { %v2416_v0 = vadd.f32 %v2415_v26, %v2343_v25  ;;  %v2887_v27 = vpop.f32.mrb[17].mxu0 }
0x19d3   :  { %2420 = vst.msk [vmem:[#allocation9] sm:$0x1] %vm2419_vm3, %v2416_v0 }
0x19d4   :  { %3281 = shalt.err (!%p3278_p0)
}
0x19d5   :  { %s3282_s8 = scalar_lea.hbm %s3782_s9, 16 }
0x19d6   :  { %p3283_p1 = scmp.ne.s32.totalorder %s3782_s9, %s3282_s8  ;;  %p3286_p2 = scmp.lt.u32.totalorder %s3282_s8, %s3782_s9 }
0x19d8   :  { %p3288_p3 = pnand %p3286_p2, %p3283_p1 }
0x19da   :  { %3291 = shalt.err (!%p3288_p3)
}
0x19db   :  { %2430 = dma.vmem_to_hbm [thread:$0]  %s2428_s1, 16, %s3782_s9, [#allocation5]  }
0x19dc   :  { %3296 = dma.done.wait [#allocation5], 16  }
0x19dd   :  { %3297 = vsyncadd [#allocation5], 4294967280 }
0x19de   :  { %2434 = vsyncpa [#allocation4], 1 }
0x19df   :  { %2435 = vsyncpa [#allocation7], 1 }
0x19e0   :  { %2436 = vsyncpa [#allocation5], 1 }

</bundles_post_ra>
